<compile_context>
chip_gen: v7x
topology: tpu7x:2x2x1
jax: 0.10.0
libtpu: 0.0.40
codegen_flags: <defaults>
</compile_context>

<pallas_src>
import numpy as np
import jax
import jax.numpy as jnp
from jax.experimental import pallas as pl
from jax.experimental.pallas import tpu as pltpu

ORBITALS = '1s 2s 2p 3s 3p 4s 3d 4p 5s 4d 5p 6s 4f 5d 6p 7s 5f 6d 7p 6f 7d 7f'.split()
POSSIBLE_ELECTRONS = dict(s=2, p=6, d=10, f=14)
ORBITALS_SIZE = len(ORBITALS)  # 22 (matches module default orbitals_size=22)

_LANE = 128      # TPU lane width
_SUBLANE = 8     # f32 sublane granularity


def generate_electron_configurations(atomic_num: int):
    electron_count, last_idx, config = 0, -1, []
    for i in ORBITALS:
        if electron_count < atomic_num:
            config.append(POSSIBLE_ELECTRONS[i[-1]])
            electron_count += POSSIBLE_ELECTRONS[i[-1]]
            last_idx += 1
        else:
            config.append(0)
    if electron_count > atomic_num:
        config[last_idx] -= electron_count - atomic_num
    return config


# Static electron-configuration lookup table, one row per atomic number, padded
# with zero rows to a sublane-aligned height.  All entries are small integers
# (0..14), exactly representable in bf16 -> the in-kernel one-hot matmul is exact.
_MAX_Z = sum(POSSIBLE_ELECTRONS[o[-1]] for o in ORBITALS)      # 156
_NZ = _MAX_Z + 1                                               # 157 valid rows
_NZ_PAD = (_NZ + _SUBLANE - 1) // _SUBLANE * _SUBLANE          # 160
_EC_TABLE_NP = np.zeros((_NZ_PAD, ORBITALS_SIZE), dtype=np.float32)
for _zz in range(_NZ):
    _EC_TABLE_NP[_zz] = generate_electron_configurations(_zz)


def _round_up(x: int, m: int) -> int:
    return (x + m - 1) // m * m


def _pair_kernel(tab_ref, zi_ref, zj_ref, phi_ref, d_ref, out_ref):
    """Row-major assembly of one tile of pairs.

    tab_ref : (160, 22) f32   resident EC table (constant index_map, DMA'd once)
    zi_ref  : (T, 1)   int32  atomic number of center atom per pair
    zj_ref  : (T, 1)   int32  atomic number of neighbor atom per pair
    phi_ref : (T, F)   f32
    d_ref   : (T, 1)   f32
    out_ref : (T, 2*22 + F + 1) f32   rows = [ec_i | ec_j | phi | d]

    The EC gather is a one-hot(z, 160) @ table matmul on the otherwise-idle MXU;
    exact for these small-integer table values in bf16 with f32 accumulation.
    """
    t = zi_ref.shape[0]
    nz, s = tab_ref.shape
    f = phi_ref.shape[1]

    tab = tab_ref[...].astype(jnp.bfloat16)                      # (160, 22)
    col = jax.lax.broadcasted_iota(jnp.int32, (t, nz), 1)        # lane-axis iota
    oh_i = (zi_ref[...] == col).astype(jnp.bfloat16)             # (T, 160)
    oh_j = (zj_ref[...] == col).astype(jnp.bfloat16)             # (T, 160)
    ec_i = jnp.dot(oh_i, tab, preferred_element_type=jnp.float32)  # (T, 22) exact
    ec_j = jnp.dot(oh_j, tab, preferred_element_type=jnp.float32)  # (T, 22) exact

    out_ref[:, 0:s] = ec_i
    out_ref[:, s:2 * s] = ec_j
    out_ref[:, 2 * s:2 * s + f] = phi_ref[...]
    out_ref[:, 2 * s + f:2 * s + f + 1] = d_ref[...]


def pair_atoms_distance_adumbration(z, idx_i, idx_j, d_ij, phi_ij,
                                    orbitals_size: int = ORBITALS_SIZE,
                                    tile: int = 8192):
    """JAX/Pallas equivalent of PairAtomsDistanceAdumbration.forward.

    Returns (P, 2*orbitals_size + phi_features + 1) float32 in the torch column
    layout [ec_i | ec_j | phi_ij | d_ij].
    """
    if orbitals_size != ORBITALS_SIZE:
        raise ValueError("orbitals_size must match the 22-orbital EC table")

    P = d_ij.shape[0]
    phi2d = phi_ij.reshape(P, -1).astype(jnp.float32)     # torch.squeeze(phi_ij)
    F = phi2d.shape[1]
    out_cols = 2 * orbitals_size + 1 + F

    # Tiny per-pair int32 gathers (4 B/pair each); the 22-wide EC gather is fused
    # into the kernel, so no (P, 22) intermediates are materialized in HBM.
    z_flat = z.reshape(-1)
    zi = jnp.clip(z_flat[idx_i], 0, _NZ - 1).astype(jnp.int32).reshape(P, 1)
    zj = jnp.clip(z_flat[idx_j], 0, _NZ - 1).astype(jnp.int32).reshape(P, 1)
    d_col = d_ij.reshape(P, 1).astype(jnp.float32)
    table = jnp.asarray(_EC_TABLE_NP)                      # (160, 22) constant

    # Pairs-axis tile: large (sweep 4096-16384; ~0.35 us/step overhead amortizes),
    # but clamped so the grid keeps >= 2 steps -> both v7x TensorCores get work.
    t_desired = _round_up(max(tile, _LANE), _LANE)
    t_two_steps = max(_LANE, _round_up(-(-P // 2), _LANE))
    t = min(t_desired, t_two_steps)
    grid = (pl.cdiv(P, t),)

    # Explicit scoped-VMEM budget: double-buffered blocks + one-hot temporaries,
    # clamped to [32 MiB, 56 MiB] (raises v5e's 16 MiB default; fits v7x's 64 MiB).
    block_bytes = t * (12 + 4 * F + 4 * out_cols)
    temp_bytes = t * (2 * 2 * _NZ_PAD + 2 * 4 * orbitals_size)
    vmem_limit = int(min(max(2 * block_bytes + temp_bytes + (4 << 20), 32 << 20),
                         56 << 20))

    cost = pl.CostEstimate(
        flops=int(4 * P * _NZ_PAD * orbitals_size),        # two one-hot matmuls/pair
        transcendentals=0,
        bytes_accessed=int(P * (12 + 4 * F + 4 * out_cols) + table.size * 4))

    out = pl.pallas_call(
        _pair_kernel,
        out_shape=jax.ShapeDtypeStruct((P, out_cols), jnp.float32),
        grid=grid,
        in_specs=[
            pl.BlockSpec((_NZ_PAD, orbitals_size), lambda p: (0, 0)),  # resident table
            pl.BlockSpec((t, 1), lambda p: (p, 0)),                    # z[idx_i]
            pl.BlockSpec((t, 1), lambda p: (p, 0)),                    # z[idx_j]
            pl.BlockSpec((t, F), lambda p: (p, 0)),                    # phi_ij
            pl.BlockSpec((t, 1), lambda p: (p, 0)),                    # d_ij
        ],
        out_specs=pl.BlockSpec((t, out_cols), lambda p: (p, 0)),
        compiler_params=pltpu.CompilerParams(
            dimension_semantics=("parallel",),
            vmem_limit_bytes=vmem_limit),
        cost_estimate=cost,
    )(table, zi, zj, phi2d, d_col)

    return out


def _reference_numpy(z, idx_i, idx_j, d_ij, phi_ij, orbitals_size=ORBITALS_SIZE):
    """Direct NumPy transcription of the torch forward."""
    z_np = np.asarray(z).squeeze()
    ec = np.array([generate_electron_configurations(int(a)) for a in z_np],
                  dtype=np.float32)
    d = np.asarray(d_ij, dtype=np.float32).squeeze()
    phi = np.asarray(phi_ij, dtype=np.float32).squeeze()
    P = d.shape[0]
    rep = np.zeros((P, 2 * orbitals_size + 1 + phi.shape[-1]), dtype=np.float32)
    rep[:, -1] = d
    rep[:, :orbitals_size] = ec[np.asarray(idx_i)]
    rep[:, orbitals_size:2 * orbitals_size] = ec[np.asarray(idx_j)]
    rep[:, 2 * orbitals_size:-1] = phi
    return rep


if __name__ == "__main__":
    key = jax.random.PRNGKey(0)
    k_z, k_i, k_j, k_d, k_phi = jax.random.split(key, 5)

    N = 8     # atoms
    P = 300   # pairs
    F = 16    # phi_ij feature width

    z = jax.random.randint(k_z, (N,), 1, 55, dtype=jnp.int32)        # atomic numbers
    idx_i = jax.random.randint(k_i, (P,), 0, N, dtype=jnp.int32)     # center atoms
    idx_j = jax.random.randint(k_j, (P,), 0, N, dtype=jnp.int32)     # neighbor atoms
    d_ij = jax.random.uniform(k_d, (P, 1), dtype=jnp.float32)        # pair distances
    phi_ij = jax.random.normal(k_phi, (P, F), dtype=jnp.float32)     # pair features

    fwd = jax.jit(pair_atoms_distance_adumbration,
                  static_argnames=("orbitals_size", "tile"))
    out = jax.block_until_ready(fwd(z, idx_i, idx_j, d_ij, phi_ij))

    ref = _reference_numpy(z, idx_i, idx_j, d_ij, phi_ij)
    if not np.allclose(np.asarray(out), ref, rtol=1e-6, atol=1e-6):
        raise AssertionError("Pallas kernel output does not match reference")
    print("KERNEL_OK")
</pallas_src>

<mosaic_0001>
module attributes {stable_mosaic.version = 11 : i64} {
  func.func @_pair_kernel(%arg0: i32, %arg1: memref<160x22xf32, #tpu.memory_space<vmem>>, %arg2: memref<256x1xi32, #tpu.memory_space<vmem>>, %arg3: memref<256x1xi32, #tpu.memory_space<vmem>>, %arg4: memref<256x16xf32, #tpu.memory_space<vmem>>, %arg5: memref<256x1xf32, #tpu.memory_space<vmem>>, %arg6: memref<256x61xf32, #tpu.memory_space<vmem>>) attributes {dimension_semantics = [#tpu.dimension_semantics<parallel>], iteration_bounds = array<i64: 2>, scalar_prefetch = 0 : i64, scratch_operands = 0 : i64, tpu.core_type = #tpu.core_type<tc>, window_params = [{pipeline_mode = #tpu.pipeline_mode<synchronous>, transform_indices = @transform_0, window_bounds = array<i64: 160, 22>}, {transform_indices = @transform_1, window_bounds = array<i64: 256, 1>}, {transform_indices = @transform_2, window_bounds = array<i64: 256, 1>}, {transform_indices = @transform_3, window_bounds = array<i64: 256, 16>}, {transform_indices = @transform_4, window_bounds = array<i64: 256, 1>}, {transform_indices = @transform_5, window_bounds = array<i64: 256, 61>}]} {
    %c0 = arith.constant 0 : index
    %c0_0 = arith.constant 0 : index
    %0 = vector.load %arg1[%c0, %c0_0] : memref<160x22xf32, #tpu.memory_space<vmem>>, vector<160x22xf32>
    %1 = arith.truncf %0 : vector<160x22xf32> to vector<160x22xbf16>
    %2 = tpu.iota {dimensions = array<i32: 1>} : vector<256x160xi32>
    %c0_1 = arith.constant 0 : index
    %c0_2 = arith.constant 0 : index
    %3 = vector.load %arg2[%c0_1, %c0_2] : memref<256x1xi32, #tpu.memory_space<vmem>>, vector<256x1xi32>
    %4 = vector.broadcast %3 : vector<256x1xi32> to vector<256x160xi32>
    %5 = arith.cmpi eq, %4, %2 : vector<256x160xi32>
    %6 = arith.extui %5 : vector<256x160xi1> to vector<256x160xi32>
    %7 = arith.sitofp %6 : vector<256x160xi32> to vector<256x160xf32>
    %8 = arith.truncf %7 : vector<256x160xf32> to vector<256x160xbf16>
    %c0_3 = arith.constant 0 : index
    %c0_4 = arith.constant 0 : index
    %9 = vector.load %arg3[%c0_3, %c0_4] : memref<256x1xi32, #tpu.memory_space<vmem>>, vector<256x1xi32>
    %10 = vector.broadcast %9 : vector<256x1xi32> to vector<256x160xi32>
    %11 = arith.cmpi eq, %10, %2 : vector<256x160xi32>
    %12 = arith.extui %11 : vector<256x160xi1> to vector<256x160xi32>
    %13 = arith.sitofp %12 : vector<256x160xi32> to vector<256x160xf32>
    %14 = arith.truncf %13 : vector<256x160xf32> to vector<256x160xbf16>
    %cst = arith.constant dense<0.000000e+00> : vector<256x22xf32>
    %15 = tpu.matmul %8, %1, %cst {dimension_numbers = #tpu.dot_dimension_numbers<[1], [0], [0], [1], [0, 0, 1, 1], [], []>} : vector<256x160xbf16>, vector<160x22xbf16>, vector<256x22xf32> -> vector<256x22xf32>
    %cst_5 = arith.constant dense<0.000000e+00> : vector<256x22xf32>
    %16 = tpu.matmul %14, %1, %cst_5 {dimension_numbers = #tpu.dot_dimension_numbers<[1], [0], [0], [1], [0, 0, 1, 1], [], []>} : vector<256x160xbf16>, vector<160x22xbf16>, vector<256x22xf32> -> vector<256x22xf32>
    %c0_6 = arith.constant 0 : index
    %c0_7 = arith.constant 0 : index
    %17 = vector.load %arg6[%c0_6, %c0_7] : memref<256x61xf32, #tpu.memory_space<vmem>>, vector<256x22xf32>
    tpu.vector_store %arg6[%c0_6, %c0_7], %15 {strides = array<i32>} : memref<256x61xf32, #tpu.memory_space<vmem>>, vector<256x22xf32>,
    %c0_8 = arith.constant 0 : index
    %c22 = arith.constant 22 : index
    %18 = vector.load %arg6[%c0_8, %c22] : memref<256x61xf32, #tpu.memory_space<vmem>>, vector<256x22xf32>
    tpu.vector_store %arg6[%c0_8, %c22], %16 {strides = array<i32>} : memref<256x61xf32, #tpu.memory_space<vmem>>, vector<256x22xf32>,
    %c0_9 = arith.constant 0 : index
    %c0_10 = arith.constant 0 : index
    %19 = vector.load %arg4[%c0_9, %c0_10] : memref<256x16xf32, #tpu.memory_space<vmem>>, vector<256x16xf32>
    %c0_11 = arith.constant 0 : index
    %c44 = arith.constant 44 : index
    %20 = vector.load %arg6[%c0_11, %c44] : memref<256x61xf32, #tpu.memory_space<vmem>>, vector<256x16xf32>
    tpu.vector_store %arg6[%c0_11, %c44], %19 {strides = array<i32>} : memref<256x61xf32, #tpu.memory_space<vmem>>, vector<256x16xf32>,
    %c0_12 = arith.constant 0 : index
    %c0_13 = arith.constant 0 : index
    %21 = vector.load %arg5[%c0_12, %c0_13] : memref<256x1xf32, #tpu.memory_space<vmem>>, vector<256x1xf32>
    %c0_14 = arith.constant 0 : index
    %c60 = arith.constant 60 : index
    %22 = vector.load %arg6[%c0_14, %c60] : memref<256x61xf32, #tpu.memory_space<vmem>>, vector<256x1xf32>
    tpu.vector_store %arg6[%c0_14, %c60], %21 {strides = array<i32>} : memref<256x61xf32, #tpu.memory_space<vmem>>, vector<256x1xf32>,
    return
  }
  func.func @transform_0(%arg0: i32) -> (i32, i32) {
    %c0_i32 = arith.constant 0 : i32
    %c0_i32_0 = arith.constant 0 : i32
    %c0_i32_1 = arith.constant 0 : i32
    return %c0_i32, %c0_i32_0 : i32, i32
  }
  func.func @transform_1(%arg0: i32) -> (i32, i32) {
    %c0_i32 = arith.constant 0 : i32
    %c0_i32_0 = arith.constant 0 : i32
    return %arg0, %c0_i32 : i32, i32
  }
  func.func @transform_2(%arg0: i32) -> (i32, i32) {
    %c0_i32 = arith.constant 0 : i32
    %c0_i32_0 = arith.constant 0 : i32
    return %arg0, %c0_i32 : i32, i32
  }
  func.func @transform_3(%arg0: i32) -> (i32, i32) {
    %c0_i32 = arith.constant 0 : i32
    %c0_i32_0 = arith.constant 0 : i32
    return %arg0, %c0_i32 : i32, i32
  }
  func.func @transform_4(%arg0: i32) -> (i32, i32) {
    %c0_i32 = arith.constant 0 : i32
    %c0_i32_0 = arith.constant 0 : i32
    return %arg0, %c0_i32 : i32, i32
  }
  func.func @transform_5(%arg0: i32) -> (i32, i32) {
    %c0_i32 = arith.constant 0 : i32
    %c0_i32_0 = arith.constant 0 : i32
    return %arg0, %c0_i32 : i32, i32
  }
}

</mosaic_0001>

<bundles_post_ra>
// kernel: pair_atoms_distance_adumbration.1
= control target key start
LH: loop header
LB: loop body
LE: loop exit
PB: predicated region body
PF: predicated region fallthrough
CT: control target
= control target key end

     0   :  { %s2961_s18 = smov 0   ;;  %s2963_s19 = smov 0   ;;  %s4307_s0 = inlined_call_operand.vmem [shape: f32[160,22], index: 0, kind: input, shape index: {}]   ;;  %s4308_s1 = inlined_call_operand.vmem [shape: s32[300,1], index: 1, kind: input, shape index: {}]   ;;  %s4309_s2 = inlined_call_operand.vmem [shape: s32[300,1], index: 2, kind: input, shape index: {}]   ;;  %s4310_s3 = inlined_call_operand.vmem [shape: f32[300,16], index: 3, kind: input, shape index: {}]   ;;  %s4311_s4 = inlined_call_operand.vmem [shape: f32[300,1], index: 4, kind: input, shape index: {}]   ;;  %s4312_s5 = inlined_call_operand.vmem [shape: f32[300,61], index: 5, kind: output, shape index: {}]  }
   0x1   :  { %s2965_s20 = smov 0  }
   0x2 LB: > { %s2974_s21 = sadd.s32 4294967295, %s2891_s20   ;;  %s2976_s22 = sadd.s32 1, %s2891_s20   ;;  %s2891_s20 = sphi %s2965_s20, %s4333_s20   ;;  %s2887_s19 = sphi %s2963_s19, %s4332_s19   ;;  %s2883_s18 = sphi %s2961_s18, %s4331_s18  }
   0x3   : > { %s144_s23 = ssub.s32 %s2891_s20, %s2976_s22  ;;  %s147_s24 = sadd.s32 1, %s2887_s19 }
   0x4   : > { %p145_p0 = scmp.eq.s32.totalorder %s144_s23, 0  ;;  %p157_p1 = scmp.ne.s32.totalorder %s2887_s19, %s2883_s18 }
   0x5   : > { %p158_p2 = scmp.eq.s32.totalorder %s2974_s21, 1  ;;  %p2487_p3 = scmp.ge.s32.totalorder %s2891_s20, 1 }
   0x6   : > { %s2984_s25 = scalar_select %p145_p0, %s2887_s19, %s147_s24  }
   0x7   : > { %p2986_p4 = por %p158_p2, %p157_p1  ;;  %p253_p5 = scmp.lt.s32.totalorder %s2891_s20, 3 }
   0x9   : > { %p254_p6 = pnand %p2487_p3, %p253_p5 }
   0xb   : > { %257 = sbr.rel (%p254_p6) target bundleno = 673 (0x2a1), region = 40 }
  0x12   : > { %s2991_s27 = sshll.u32 %s2974_s21, 5  ;;  %v373_v0 = vld [vmem:[%s4307_s0] sm:$0xff]  ;;  %v374_v1 = vld [vmem:[%s4307_s0 + $0x8] sm:$0xff]  ;;  %v375_v2 = vld [vmem:[%s4307_s0 + $0x10] sm:$0xff]  ;;  %v2925_v3 = vmov 0   ;;  %s2926_s28 = smov 44  }
  0x13   : > { %2836 = vset.pattern.permute.xlu1 %v2925_v3  ;;  %2835 = vset.pattern.permute.xlu0 %v2925_v3  ;;  %p316_p7 = scmp.lt.s32.totalorder %s2991_s27, 37  ;;  %v393_v4 = vpack.c.bf16 %v374_v1, %v373_v0  ;;  %v376_v5 = vld [vmem:[%s4307_s0 + $0x18] sm:$0xff]  ;;  %v377_v7 = vld [vmem:[%s4307_s0 + $0x20] sm:$0xff]  ;;  %v378_v8 = vld [vmem:[%s4307_s0 + $0x28] sm:$0xff]  ;;  %vm1110_vm4 = vcmask 261120   ;;  %s2930_s7 = smov 22  }
  0x14   : > { %1368 = vmatprep.subr.bf16.mxu1 %v2925_v3  ;;  %1159 = vmatprep.subr.bf16.mxu0 %v2925_v3  ;;  %v394_v6 = vpack.c.bf16 %v376_v5, %v375_v2  ;;  %v395_v11 = vpack.c.bf16 %v378_v8, %v377_v7  ;;  %v379_v12 = vld [vmem:[%s4307_s0 + $0x30] sm:$0xff]  ;;  %v380_v13 = vld [vmem:[%s4307_s0 + $0x38] sm:$0xff]  ;;  %v381_v17 = vld [vmem:[%s4307_s0 + $0x40] sm:$0xff]  ;;  %s308_s8 = sand.u32 1, %s2883_s18   ;;  %s2117_s18 = ssub.s32 (%p2986_p4), 38, %s2991_s27 }
  0x15   : > { %s317_s11 = scalar_select %p316_p7, %s2991_s27, 37  ;;  %1369 = vmatpush1.bf16.msra.mxu1 %v393_v4  ;;  %1160 = vmatpush1.bf16.msra.mxu0 %v393_v4  ;;  %v396_v16 = vpack.c.bf16 %v380_v13, %v379_v12  ;;  %v382_v18 = vld [vmem:[%s4307_s0 + $0x48] sm:$0xff]  ;;  %v383_v22 = vld [vmem:[%s4307_s0 + $0x50] sm:$0xff]  ;;  %v384_v23 = vld [vmem:[%s4307_s0 + $0x58] sm:$0xff] }
  0x16   : > { %1370 = vmatprep.subr.bf16.mxu1 %v2925_v3  ;;  %1161 = vmatprep.subr.bf16.mxu0 %v2925_v3  ;;  %v397_v21 = vpack.c.bf16 %v382_v18, %v381_v17  ;;  %v398_v26 = vpack.c.bf16 %v384_v23, %v383_v22  ;;  %v385_v27 = vld [vmem:[%s4307_s0 + $0x60] sm:$0xff]  ;;  %v386_v28 = vld [vmem:[%s4307_s0 + $0x68] sm:$0xff]  ;;  %v387_v32 = vld [vmem:[%s4307_s0 + $0x70] sm:$0xff]  ;;  %s2488_s9 = sshll.u32 %s308_s8, 8  ;;  %p2118_p8 = scmp.lt.s32.totalorder (%p2986_p4), %s2117_s18, 32 }
  0x17   : > { %s3019_s16 = sshll.u32 %s317_s11, 3  ;;  %v399_v31 = vpack.c.bf16 %v386_v28, %v385_v27  ;;  %v388_v33 = vld [vmem:[%s4307_s0 + $0x78] sm:$0xff]  ;;  %v389_v37 = vld [vmem:[%s4307_s0 + $0x80] sm:$0xff]  ;;  %v390_v38 = vld [vmem:[%s4307_s0 + $0x88] sm:$0xff]  ;;  %s3764_s10 = scalar_lea.vmem [#allocation2], %s2488_s9  }
  0x18   : > { %s3025_s23 = scalar_lea.vmem %s4309_s2, %s3019_s16  ;;  %v400_v36 = vpack.c.bf16 %v388_v33, %v387_v32  ;;  %v401_v41 = vpack.c.bf16 %v390_v38, %v389_v37  ;;  %v391_v42 = vld [vmem:[%s4307_s0 + $0x90] sm:$0xff]  ;;  %v392_v43 = vld [vmem:[%s4307_s0 + $0x98] sm:$0xff]  ;;  %s3103_s17 = scalar_lea.vmem %s4308_s1, %s3019_s16 }
  0x19   : > { %v760_v9 = vld [vmem:[%s3025_s23 + $0x10] sm:$0xff]  ;;  %v758_v10 = vld [vmem:[%s3025_s23] sm:$0xff]  ;;  %1371 = vmatpush1.bf16.msra.mxu1 %v394_v6  ;;  %1162 = vmatpush1.bf16.msra.mxu0 %v394_v6  ;;  %v761_v14 = vld [vmem:[%s3025_s23 + $0x18] sm:$0xff]  ;;  %v402_v46 = vpack.c.bf16 %v392_v43, %v391_v42  ;;  %s3161_s24 = scalar_lea.vmem %s4310_s3, %s3019_s16  ;;  %s3381_s6 = scalar_lea.vmem %s4311_s4, %s3019_s16 }
  0x1a   : > { %797 = vperm.xlu1 %2836, %v760_v9   ;;  %791 = vperm.xlu0 %2835, %v758_v10   ;;  %v759_v15 = vld [vmem:[%s3025_s23 + $0x8] sm:$0xff]  ;;  %v762_v20 = vld [vmem:[%s3025_s23 + $0x20] sm:$0xff]  ;;  %v765_v24 = vld [vmem:[%s3025_s23 + $0x38] sm:$0xff]  ;;  %s2929_s16 = smov 60   ;;  %s2738_s11 = sshll.u32 (%p2986_p4), %s2974_s21, 8 }
  0x1b   : > { %1372 = vmatprep.subr.bf16.mxu1 %v2925_v3  ;;  %1163 = vmatprep.subr.bf16.mxu0 %v2925_v3  ;;  %v763_v19 = vld [vmem:[%s3025_s23 + $0x28] sm:$0xff]  ;;  %v764_v25 = vld [vmem:[%s3025_s23 + $0x30] sm:$0xff]  ;;  %v766_v30 = vld [vmem:[%s3025_s23 + $0x40] sm:$0xff]  ;;  %s4175_s14 = scalar_lea.vmem (%p2986_p4), %s4312_s5, %s2738_s11  }
  0x1c   : > { %v767_v29 = vld [vmem:[%s3025_s23 + $0x48] sm:$0xff]  ;;  %v769_v34 = vld [vmem:[%s3025_s23 + $0x58] sm:$0xff]  ;;  %v768_v35 = vld [vmem:[%s3025_s23 + $0x50] sm:$0xff] }
  0x1d   : > { %1373 = vmatpush1.bf16.msra.mxu1 %v395_v11  ;;  %1164 = vmatpush1.bf16.msra.mxu0 %v395_v11  ;;  %v771_v39 = vld [vmem:[%s3025_s23 + $0x68] sm:$0xff]  ;;  %v770_v40 = vld [vmem:[%s3025_s23 + $0x60] sm:$0xff]  ;;  %v773_v44 = vld [vmem:[%s3025_s23 + $0x78] sm:$0xff] }
  0x1e   : > { %800 = vperm.xlu1 %2836, %v761_v14   ;;  %794 = vperm.xlu0 %2835, %v759_v15   ;;  %v772_v45 = vld [vmem:[%s3025_s23 + $0x70] sm:$0xff]  ;;  %v407_v47 = vld [vmem:[%s3103_s17 + $0x8] sm:$0xff]  ;;  %v406_v48 = vld [vmem:[%s3103_s17] sm:$0xff] }
  0x1f   : > { %1374 = vmatprep.subr.bf16.mxu1 %v2925_v3  ;;  %1165 = vmatprep.subr.bf16.mxu0 %v2925_v3  ;;  %v775_v49 = vld [vmem:[%s3025_s23 + $0x88] sm:$0xff]  ;;  %v774_v50 = vld [vmem:[%s3025_s23 + $0x80] sm:$0xff]  ;;  %v409_v51 = vld [vmem:[%s3103_s17 + $0x18] sm:$0xff] }
  0x20   : > { %v408_v52 = vld [vmem:[%s3103_s17 + $0x10] sm:$0xff]  ;;  %v777_v53 = vld [vmem:[%s3025_s23 + $0x98] sm:$0xff]  ;;  %v411_v55 = vld [vmem:[%s3103_s17 + $0x28] sm:$0xff] }
  0x21   : > { %1375 = vmatpush1.bf16.msra.mxu1 %v396_v16  ;;  %1166 = vmatpush1.bf16.msra.mxu0 %v396_v16  ;;  %v776_v54 = vld [vmem:[%s3025_s23 + $0x90] sm:$0xff]  ;;  %v410_v56 = vld [vmem:[%s3103_s17 + $0x20] sm:$0xff]  ;;  %v779_v57 = vld [vmem:[%s3025_s23 + $0xa8] sm:$0xff] }
  0x22   : > { %806 = vperm.xlu1 %2836, %v763_v19   ;;  %803 = vperm.xlu0 %2835, %v762_v20   ;;  %v778_v58 = vld [vmem:[%s3025_s23 + $0xa0] sm:$0xff]  ;;  %v413_v59 = vld [vmem:[%s3103_s17 + $0x38] sm:$0xff]  ;;  %v412_v60 = vld [vmem:[%s3103_s17 + $0x30] sm:$0xff] }
  0x23   : > { %1376 = vmatprep.subr.bf16.mxu1 %v2925_v3  ;;  %1167 = vmatprep.subr.bf16.mxu0 %v2925_v3  ;;  %v781_v61 = vld [vmem:[%s3025_s23 + $0xb8] sm:$0xff]  ;;  %v780_v62 = vld [vmem:[%s3025_s23 + $0xb0] sm:$0xff]  ;;  %v415_v63 = vld [vmem:[%s3103_s17 + $0x48] sm:$0xff] }
  0x24   : > { %v414_v0 = vld [vmem:[%s3103_s17 + $0x40] sm:$0xff]  ;;  %v783_v1 = vld [vmem:[%s3025_s23 + $0xc8] sm:$0xff]  ;;  %v416_v4 = vld [vmem:[%s3103_s17 + $0x50] sm:$0xff] }
  0x25   : > { %1377 = vmatpush1.bf16.msra.mxu1 %v397_v21  ;;  %1168 = vmatpush1.bf16.msra.mxu0 %v397_v21  ;;  %v782_v2 = vld [vmem:[%s3025_s23 + $0xc0] sm:$0xff]  ;;  %v785_v5 = vld [vmem:[%s3025_s23 + $0xd8] sm:$0xff]  ;;  %v784_v6 = vld [vmem:[%s3025_s23 + $0xd0] sm:$0xff] }
  0x26   : > { %812 = vperm.xlu1 %2836, %v765_v24   ;;  %809 = vperm.xlu0 %2835, %v764_v25   ;;  %v419_v7 = vld [vmem:[%s3103_s17 + $0x68] sm:$0xff]  ;;  %v418_v8 = vld [vmem:[%s3103_s17 + $0x60] sm:$0xff]  ;;  %v421_v11 = vld [vmem:[%s3103_s17 + $0x78] sm:$0xff] }
  0x27   : > { %1378 = vmatprep.subr.bf16.mxu1 %v2925_v3  ;;  %1169 = vmatprep.subr.bf16.mxu0 %v2925_v3  ;;  %v787_v9 = vld [vmem:[%s3025_s23 + $0xe8] sm:$0xff]  ;;  %v786_v10 = vld [vmem:[%s3025_s23 + $0xe0] sm:$0xff]  ;;  %v420_v12 = vld [vmem:[%s3103_s17 + $0x70] sm:$0xff] }
  0x28   : > { %v789_v13 = vld [vmem:[%s3025_s23 + $0xf8] sm:$0xff]  ;;  %v788_v14 = vld [vmem:[%s3025_s23 + $0xf0] sm:$0xff]  ;;  %v423_v15 = vld [vmem:[%s3103_s17 + $0x88] sm:$0xff] }
  0x29   : > { %1379 = vmatpush1.bf16.msra.mxu1 %v398_v26  ;;  %1170 = vmatpush1.bf16.msra.mxu0 %v398_v26  ;;  %v422_v16 = vld [vmem:[%s3103_s17 + $0x80] sm:$0xff]  ;;  %v425_v17 = vld [vmem:[%s3103_s17 + $0x98] sm:$0xff]  ;;  %v424_v18 = vld [vmem:[%s3103_s17 + $0x90] sm:$0xff] }
  0x2a   : > { %818 = vperm.xlu1 %2836, %v767_v29   ;;  %815 = vperm.xlu0 %2835, %v766_v30   ;;  %v427_v19 = vld [vmem:[%s3103_s17 + $0xa8] sm:$0xff]  ;;  %v426_v20 = vld [vmem:[%s3103_s17 + $0xa0] sm:$0xff]  ;;  %v429_v21 = vld [vmem:[%s3103_s17 + $0xb8] sm:$0xff]  ;;  %v403_v29 = vlaneseq }
  0x2b   : > { %1380 = vmatprep.subr.bf16.mxu1 %v2925_v3  ;;  %1171 = vmatprep.subr.bf16.mxu0 %v2925_v3  ;;  %v428_v22 = vld [vmem:[%s3103_s17 + $0xb0] sm:$0xff]  ;;  %v431_v23 = vld [vmem:[%s3103_s17 + $0xc8] sm:$0xff]  ;;  %v430_v24 = vld [vmem:[%s3103_s17 + $0xc0] sm:$0xff] }
  0x2c   : > { %v433_v25 = vld [vmem:[%s3103_s17 + $0xd8] sm:$0xff]  ;;  %v432_v26 = vld [vmem:[%s3103_s17 + $0xd0] sm:$0xff]  ;;  %v435_v27 = vld [vmem:[%s3103_s17 + $0xe8] sm:$0xff]  ;;  %v3155_v32 = vand.u32 127, %v403_v29 }
  0x2d   : > { %1381 = vmatpush1.bf16.msra.mxu1 %v399_v31  ;;  %1172 = vmatpush1.bf16.msra.mxu0 %v399_v31  ;;  %v434_v28 = vld [vmem:[%s3103_s17 + $0xe0] sm:$0xff]  ;;  %v437_v30 = vld [vmem:[%s3103_s17 + $0xf8] sm:$0xff]  ;;  %v436_v31 = vld [vmem:[%s3103_s17 + $0xf0] sm:$0xff] }
  0x2e   : > { %824 = vperm.xlu1 %2836, %v769_v34   ;;  %821 = vperm.xlu0 %2835, %v768_v35   ;;  %v1723_v33 = vld [vmem:[%s3161_s24] sm:$0xff]  ;;  %v3165_v34 = vadd.s32 128, %v3155_v32  ;;  %v1724_v35 = vld [vmem:[%s3161_s24 + $0x8] sm:$0xff]  ;;  %v1725_v38 = vld [vmem:[%s3161_s24 + $0x10] sm:$0xff] }
  0x2f   : > { %1382 = vmatprep.subr.bf16.mxu1 %v2925_v3  ;;  %1173 = vmatprep.subr.bf16.mxu0 %v2925_v3  ;;  %v1742_v29 = vld [vmem:[%s3161_s24 + $0x98] sm:$0xff] }
  0x31   : > { %1383 = vmatpush1.bf16.msra.mxu1 %v400_v36  ;;  %1174 = vmatpush1.bf16.msra.mxu0 %v400_v36 }
  0x32   : > { %830 = vperm.xlu1 %2836, %v771_v39   ;;  %827 = vperm.xlu0 %2835, %v770_v40   ;;  %v1726_v39 = vld [vmem:[%s3161_s24 + $0x18] sm:$0xff]  ;;  %v2927_v40 = vmov 0.0  }
  0x33   : > { %1384 = vmatprep.subr.bf16.mxu1 %v2925_v3  ;;  %1175 = vmatprep.subr.bf16.mxu0 %v2925_v3 }
  0x35   : > { %1385 = vmatpush1.bf16.msra.mxu1 %v401_v41  ;;  %1176 = vmatpush1.bf16.msra.mxu0 %v401_v41 }
  0x36   : > { %836 = vperm.xlu1 %2836, %v773_v44   ;;  %833 = vperm.xlu0 %2835, %v772_v45  }
  0x37   : > { %1386 = vmatprep.subr.bf16.mxu1 %v2925_v3  ;;  %1177 = vmatprep.subr.bf16.mxu0 %v2925_v3  ;;  %v417_v3 = vld [vmem:[%s3103_s17 + $0x58] sm:$0xff] }
  0x39   : > { %1387 = vmatpush1.bf16.msra.mxu1 %v402_v46  ;;  %1178 = vmatpush1.bf16.msra.mxu0 %v402_v46 }
  0x3a   : > { %442 = vperm.xlu1 %2836, %v407_v47   ;;  %439 = vperm.xlu0 %2835, %v406_v48  }
  0x3e   : > { %842 = vperm.xlu1 %2836, %v775_v49   ;;  %839 = vperm.xlu0 %2835, %v774_v50   ;;  %v1727_v49 = vld [vmem:[%s3161_s24 + $0x20] sm:$0xff] }
  0x42   : > { %448 = vperm.xlu1 %2836, %v409_v51   ;;  %445 = vperm.xlu0 %2835, %v408_v52   ;;  %v1728_v52 = vld [vmem:[%s3161_s24 + $0x28] sm:$0xff] }
  0x46   : > { %848 = vperm.xlu1 %2836, %v777_v53   ;;  %845 = vperm.xlu0 %2835, %v776_v54   ;;  %v2928_v53 = vmov 1.0|1.0   ;;  %v1729_v54 = vld [vmem:[%s3161_s24 + $0x30] sm:$0xff] }
  0x4a   : > { %454 = vperm.xlu1 %2836, %v411_v55   ;;  %451 = vperm.xlu0 %2835, %v410_v56  }
  0x4e   : > { %854 = vperm.xlu1 %2836, %v779_v57   ;;  %851 = vperm.xlu0 %2835, %v778_v58   ;;  %v1730_v57 = vld [vmem:[%s3161_s24 + $0x38] sm:$0xff] }
  0x52   : > { %460 = vperm.xlu1 %2836, %v413_v59   ;;  %457 = vperm.xlu0 %2835, %v412_v60   ;;  %v1731_v60 = vld [vmem:[%s3161_s24 + $0x40] sm:$0xff] }
  0x56   : > { %860 = vperm.xlu1 %2836, %v781_v61   ;;  %857 = vperm.xlu0 %2835, %v780_v62  }
  0x5a   : > { %466 = vperm.xlu1 %2836, %v415_v63   ;;  %463 = vperm.xlu0 %2835, %v414_v0   ;;  %v1732_v63 = vld [vmem:[%s3161_s24 + $0x48] sm:$0xff] }
  0x5e   : > { %866 = vperm.xlu1 %2836, %v783_v1   ;;  %863 = vperm.xlu0 %2835, %v782_v2   ;;  %v1733_v1 = vld [vmem:[%s3161_s24 + $0x50] sm:$0xff] }
  0x62   : > { %472 = vperm.xlu1 %2836, %v417_v3   ;;  %469 = vperm.xlu0 %2835, %v416_v4   ;;  %v1734_v4 = vld [vmem:[%s3161_s24 + $0x58] sm:$0xff] }
  0x66   : > { %872 = vperm.xlu1 %2836, %v785_v5   ;;  %869 = vperm.xlu0 %2835, %v784_v6  }
  0x6a   : > { %478 = vperm.xlu1 %2836, %v419_v7   ;;  %475 = vperm.xlu0 %2835, %v418_v8   ;;  %v1735_v7 = vld [vmem:[%s3161_s24 + $0x60] sm:$0xff] }
  0x6e   : > { %878 = vperm.xlu1 %2836, %v787_v9   ;;  %875 = vperm.xlu0 %2835, %v786_v10   ;;  %v1736_v10 = vld [vmem:[%s3161_s24 + $0x68] sm:$0xff] }
  0x72   : > { %484 = vperm.xlu1 %2836, %v421_v11   ;;  %481 = vperm.xlu0 %2835, %v420_v12   ;;  %v1737_v12 = vld [vmem:[%s3161_s24 + $0x70] sm:$0xff] }
  0x76   : > { %884 = vperm.xlu1 %2836, %v789_v13   ;;  %881 = vperm.xlu0 %2835, %v788_v14  }
  0x7a   : > { %490 = vperm.xlu1 %2836, %v423_v15   ;;  %487 = vperm.xlu0 %2835, %v422_v16   ;;  %v1738_v15 = vld [vmem:[%s3161_s24 + $0x78] sm:$0xff] }
  0x7e   : > { %496 = vperm.xlu1 %2836, %v425_v17   ;;  %493 = vperm.xlu0 %2835, %v424_v18   ;;  %v1739_v18 = vld [vmem:[%s3161_s24 + $0x80] sm:$0xff] }
  0x82   : > { %502 = vperm.xlu1 %2836, %v427_v19   ;;  %499 = vperm.xlu0 %2835, %v426_v20  }
  0x86   : > { %508 = vperm.xlu1 %2836, %v429_v21   ;;  %505 = vperm.xlu0 %2835, %v428_v22   ;;  %v1740_v21 = vld [vmem:[%s3161_s24 + $0x88] sm:$0xff] }
  0x8a   : > { %514 = vperm.xlu1 %2836, %v431_v23   ;;  %511 = vperm.xlu0 %2835, %v430_v24  }
  0x8e   : > { %520 = vperm.xlu1 %2836, %v433_v25   ;;  %517 = vperm.xlu0 %2835, %v432_v26   ;;  %v1741_v26 = vld [vmem:[%s3161_s24 + $0x90] sm:$0xff] }
  0x92   : > { %526 = vperm.xlu1 %2836, %v435_v27   ;;  %523 = vperm.xlu0 %2835, %v434_v28  }
  0x96   : > { %532 = vperm.xlu1 %2836, %v437_v30   ;;  %529 = vperm.xlu0 %2835, %v436_v31  }
  0x99   : > { %v798_v36 = vpop.permute.xlu1 %797  ;;  %v792_v37 = vpop.permute.xlu0 %791 }
  0x9a   : > { %vm891_vm0 = vcmp.eq.s32.totalorder %v798_v36, %v3165_v34  ;;  %1787 = vrot.lane.b32.xlu0 %v1723_v33, %s2926_s28  ;;  %1789 = vrot.lane.b32.xlu1 %v1724_v35, %s2926_s28  ;;  %vm887_vm1 = vcmp.eq.s32.totalorder %v792_v37, %v3165_v34  ;;  %vm886_vm6 = vcmp.eq.s32.totalorder %v792_v37, %v3155_v32  ;;  %v1743_v33 = vld [vmem:[%s3161_s24 + $0xa0] sm:$0xff]  ;;  %v1744_v37 = vld [vmem:[%s3161_s24 + $0xa8] sm:$0xff] }
  0x9b   : > { %v2566_v41 = vsel %vm891_vm0, 1.0, %v2927_v40  ;;  %v2562_v45 = vsel %vm887_vm1, 1.0, %v2927_v40  ;;  %vm890_vm10 = vcmp.eq.s32.totalorder %v798_v36, %v3155_v32 }
  0x9d   : > { %v801_v42 = vpop.permute.xlu1 %800  ;;  %v795_v43 = vpop.permute.xlu0 %794 }
  0x9e   : > { %vm893_vm2 = vcmp.eq.s32.totalorder %v801_v42, %v3165_v34  ;;  %vm889_vm3 = vcmp.eq.s32.totalorder %v795_v43, %v3165_v34  ;;  %1791 = vrot.lane.b32.xlu0 %v1725_v38, %s2926_s28  ;;  %vm888_vm5 = vcmp.eq.s32.totalorder %v795_v43, %v3155_v32  ;;  %1793 = vrot.lane.b32.xlu1 %v1726_v39, %s2926_s28  ;;  %v1745_v43 = vld [vmem:[%s3161_s24 + $0xb0] sm:$0xff] }
  0x9f   : > { %v2568_v44 = vsel %vm893_vm2, 1.0, %v2927_v40  ;;  %v2564_v46 = vsel %vm889_vm3, 1.0, %v2927_v40  ;;  %vm2674_vm7 = vmpackc.low %vm888_vm5, %vm886_vm6  ;;  %vm892_vm11 = vcmp.eq.s32.totalorder %v801_v42, %v3155_v32 }
  0xa0   : > { %v1081_v47 = vpack.c.bf16 %v2568_v44, %v2566_v41  ;;  %v1079_v48 = vpack.c.bf16 %v2564_v46, %v2562_v45  ;;  %vm2677_vm12 = vmpackc.low %vm892_vm11, %vm890_vm10  ;;  %v1746_v46 = vld [vmem:[%s3161_s24 + $0xb8] sm:$0xff] }
  0xa1   : > { %v807_v50 = vpop.permute.xlu1 %806  ;;  %v804_v51 = vpop.permute.xlu0 %803 }
  0xa2   : > { %2673 = vmatprep.mubr.msk.bf16.mxu1 %vm1110_vm4, %v1079_v48  ;;  %1795 = vrot.lane.b32.xlu0 %v1727_v49, %s2926_s28  ;;  %vm897_vm8 = vcmp.eq.s32.totalorder %v807_v50, %v3165_v34  ;;  %vm895_vm9 = vcmp.eq.s32.totalorder %v804_v51, %v3165_v34  ;;  %vm896_vm15 = vcmp.eq.s32.totalorder %v807_v50, %v3155_v32  ;;  %v1747_v49 = vld [vmem:[%s3161_s24 + $0xc0] sm:$0xff] }
  0xa3   : > { %2675 = vmatmul.mubr.msk.bf16.vlgmr.msra.gmra.mrb[0].mxu1 %vm2674_vm7, %v2928_v53  ;;  %1797 = vrot.lane.b32.xlu1 %v1728_v52, %s2926_s28  ;;  %v2572_v58 = vsel %vm897_vm8, 1.0, %v2927_v40  ;;  %v2570_v59 = vsel %vm895_vm9, 1.0, %v2927_v40  ;;  %vm894_vm0 = vcmp.eq.s32.totalorder %v804_v51, %v3155_v32  ;;  %v1748_v52 = vld [vmem:[%s3161_s24 + $0xc8] sm:$0xff] }
  0xa4   : > { %2676 = vmatprep.mubr.msk.bf16.mxu1 %vm1110_vm4, %v1081_v47  ;;  %v1083_v0 = vpack.c.bf16 %v2572_v58, %v2570_v59  ;;  %vm2680_vm1 = vmpackc.low %vm896_vm15, %vm894_vm0  ;;  %v1749_v58 = vld [vmem:[%s3161_s24 + $0xd0] sm:$0xff] }
  0xa5   : > { %v813_v55 = vpop.permute.xlu1 %812  ;;  %v810_v56 = vpop.permute.xlu0 %809 }
  0xa6   : > { %1799 = vrot.lane.b32.xlu0 %v1729_v54, %s2926_s28  ;;  %vm901_vm13 = vcmp.eq.s32.totalorder %v813_v55, %v3165_v34  ;;  %vm899_vm14 = vcmp.eq.s32.totalorder %v810_v56, %v3165_v34  ;;  %vm900_vm5 = vcmp.eq.s32.totalorder %v813_v55, %v3155_v32  ;;  %vm898_vm6 = vcmp.eq.s32.totalorder %v810_v56, %v3155_v32 }
  0xa7   : > { %1801 = vrot.lane.b32.xlu1 %v1730_v57, %s2926_s28  ;;  %v2576_v5 = vsel %vm901_vm13, 1.0, %v2927_v40  ;;  %v2574_v6 = vsel %vm899_vm14, 1.0, %v2927_v40  ;;  %vm2683_vm7 = vmpackc.low %vm900_vm5, %vm898_vm6 }
  0xa8   : > { %v1085_v11 = vpack.c.bf16 %v2576_v5, %v2574_v6 }
  0xa9   : > { %v3202_v61 = vpop.permute.xlu1 %818  ;;  %v3204_v62 = vpop.permute.xlu0 %815 }
  0xaa   : > { %1803 = vrot.lane.b32.xlu0 %v1731_v60, %s2926_s28  ;;  %vm905_vm2 = vcmp.eq.s32.totalorder %v3202_v61, %v3165_v34  ;;  %vm903_vm3 = vcmp.eq.s32.totalorder %v3204_v62, %v3165_v34  ;;  %vm904_vm15 = vcmp.eq.s32.totalorder %v3202_v61, %v3155_v32  ;;  %vm902_vm0 = vcmp.eq.s32.totalorder %v3204_v62, %v3155_v32  ;;  %v1750_v61 = vld [vmem:[%s3161_s24 + $0xd8] sm:$0xff] }
  0xab   : > { %2678 = vmatmul.mubr.msk.bf16.gmra.mrb[4].mxu1 %vm2677_vm12, %v2928_v53  ;;  %1805 = vrot.lane.b32.xlu1 %v1732_v63, %s2926_s28  ;;  %v2580_v16 = vsel %vm905_vm2, 1.0, %v2927_v40  ;;  %v2578_v17 = vsel %vm903_vm3, 1.0, %v2927_v40  ;;  %vm2686_vm3 = vmpackc.low %vm904_vm15, %vm902_vm0 }
  0xac   : > { %2679 = vmatprep.mubr.msk.bf16.mxu1 %vm1110_vm4, %v1083_v0  ;;  %v1087_v22 = vpack.c.bf16 %v2580_v16, %v2578_v17  ;;  %v1751_v0 = vld [vmem:[%s3161_s24 + $0xe0] sm:$0xff] }
  0xad   : > { %v3214_v2 = vpop.permute.xlu1 %824  ;;  %v3216_v3 = vpop.permute.xlu0 %821  ;;  %v1916_v16 = vld [vmem:[%s3381_s6] sm:$0xff] }
  0xae   : > { %1807 = vrot.lane.b32.xlu0 %v1733_v1, %s2926_s28  ;;  %vm909_vm12 = vcmp.eq.s32.totalorder %v3214_v2, %v3165_v34  ;;  %vm907_vm13 = vcmp.eq.s32.totalorder %v3216_v3, %v3165_v34 }
  0xaf   : > { %1809 = vrot.lane.b32.xlu1 %v1734_v4, %s2926_s28  ;;  %v2584_v30 = vsel %vm909_vm12, 1.0, %v2927_v40  ;;  %v2582_v31 = vsel %vm907_vm13, 1.0, %v2927_v40 }
  0xb0   : > { %v1089_v38 = vpack.c.bf16 %v2584_v30, %v2582_v31  ;;  %v1920_v30 = vld [vmem:[%s3381_s6 + $0x20] sm:$0xff] }
  0xb1   : > { %v3226_v8 = vpop.permute.xlu1 %830  ;;  %v3228_v9 = vpop.permute.xlu0 %827 }
  0xb2   : > { %1811 = vrot.lane.b32.xlu0 %v1735_v7, %s2926_s28 }
  0xb3   : > { %2681 = vmatmul.mubr.msk.bf16.gmra.mrb[8].mxu1 %vm2680_vm1, %v2928_v53  ;;  %1813 = vrot.lane.b32.xlu1 %v1736_v10, %s2926_s28 }
  0xb4   : > { %2682 = vmatprep.mubr.msk.bf16.mxu1 %vm1110_vm4, %v1085_v11  ;;  %v1754_v11 = vld [vmem:[%s3161_s24 + $0xf8] sm:$0xff] }
  0xb5   : > { %v3240_v13 = vpop.permute.xlu1 %836  ;;  %v3242_v14 = vpop.permute.xlu0 %833 }
  0xb6   : > { %1815 = vrot.lane.b32.xlu0 %v1737_v12, %s2926_s28 }
  0xb7   : > { %1817 = vrot.lane.b32.xlu1 %v1738_v15, %s2926_s28 }
  0xb9   : > { %v443_v19 = vpop.permute.xlu1 %442  ;;  %v440_v20 = vpop.permute.xlu0 %439 }
  0xba   : > { %vm535_vm8 = vcmp.eq.s32.totalorder %v440_v20, %v3165_v34  ;;  %vm537_vm9 = vcmp.eq.s32.totalorder %v443_v19, %v3165_v34  ;;  %vm536_vm10 = vcmp.eq.s32.totalorder %v443_v19, %v3155_v32  ;;  %vm534_vm11 = vcmp.eq.s32.totalorder %v440_v20, %v3155_v32  ;;  %1819 = vrot.lane.b32.xlu0 %v1739_v18, %s2926_s28  ;;  %v1917_v19 = vld [vmem:[%s3381_s6 + $0x8] sm:$0xff] }
  0xbb   : > { %2684 = vmatmul.mubr.msk.bf16.gmra.mrb[12].mxu1 %vm2683_vm7, %v2928_v53  ;;  %v2498_v23 = vsel %vm535_vm8, 1.0, %v2927_v40  ;;  %v2500_v24 = vsel %vm537_vm9, 1.0, %v2927_v40  ;;  %1821 = vrot.lane.b32.xlu1 %v1740_v21, %s2926_s28  ;;  %vm2626_vm14 = vmpackc.low %vm536_vm10, %vm534_vm11  ;;  %vm913_vm7 = vcmp.eq.s32.totalorder %v3226_v8, %v3165_v34  ;;  %vm911_vm8 = vcmp.eq.s32.totalorder %v3228_v9, %v3165_v34 }
  0xbc   : > { %2685 = vmatprep.mubr.msk.bf16.mxu1 %vm1110_vm4, %v1087_v22  ;;  %v727_v25 = vpack.c.bf16 %v2500_v24, %v2498_v23  ;;  %vm908_vm10 = vcmp.eq.s32.totalorder %v3214_v2, %v3155_v32  ;;  %vm906_vm11 = vcmp.eq.s32.totalorder %v3216_v3, %v3155_v32  ;;  %v2588_v47 = vsel %vm913_vm7, 1.0, %v2927_v40  ;;  %v1752_v3 = vld [vmem:[%s3161_s24 + $0xe8] sm:$0xff]  ;;  %v1918_v22 = vld [vmem:[%s3381_s6 + $0x10] sm:$0xff] }
  0xbd   : > { %v3268_v27 = vpop.permute.xlu1 %842  ;;  %v3270_v28 = vpop.permute.xlu0 %839  ;;  %v2586_v48 = vsel %vm911_vm8, 1.0, %v2927_v40 }
  0xbe   : > { %2625 = vmatprep.mubr.msk.bf16.mxu0 %vm1110_vm4, %v727_v25  ;;  %1823 = vrot.lane.b32.xlu0 %v1741_v26, %s2926_s28  ;;  %v1091_v54 = vpack.c.bf16 %v2588_v47, %v2586_v48  ;;  %v1919_v25 = vld [vmem:[%s3381_s6 + $0x18] sm:$0xff]  ;;  %v1924_v47 = vld [vmem:[%s3381_s6 + $0x40] sm:$0xff] }
  0xbf   : > { %2627 = vmatmul.mubr.msk.bf16.vlgmr.msra.gmra.mrb[0].mxu0 %vm2626_vm14, %v2928_v53  ;;  %1825 = vrot.lane.b32.xlu1 %v1742_v29, %s2926_s28  ;;  %vm2689_vm14 = vmpackc.low %vm908_vm10, %vm906_vm11 }
  0xc1   : > { %v449_v35 = vpop.permute.xlu1 %448  ;;  %v446_v36 = vpop.permute.xlu0 %445 }
  0xc2   : > { %vm541_vm1 = vcmp.eq.s32.totalorder %v449_v35, %v3165_v34  ;;  %vm539_vm2 = vcmp.eq.s32.totalorder %v446_v36, %v3165_v34  ;;  %vm540_vm5 = vcmp.eq.s32.totalorder %v449_v35, %v3155_v32  ;;  %vm538_vm6 = vcmp.eq.s32.totalorder %v446_v36, %v3155_v32  ;;  %1827 = vrot.lane.b32.xlu0 %v1743_v33, %s2926_s28  ;;  %v1921_v35 = vld [vmem:[%s3381_s6 + $0x28] sm:$0xff] }
  0xc3   : > { %v2504_v39 = vsel %vm541_vm1, 1.0, %v2927_v40  ;;  %v2502_v41 = vsel %vm539_vm2, 1.0, %v2927_v40  ;;  %2687 = vmatmul.mubr.msk.bf16.gmra.mrb[16].mxu1 %vm2686_vm3, %v2928_v53  ;;  %1829 = vrot.lane.b32.xlu1 %v1744_v37, %s2926_s28  ;;  %vm2629_vm9 = vmpackc.low %vm540_vm5, %vm538_vm6  ;;  %vm917_vm1 = vcmp.eq.s32.totalorder %v3240_v13, %v3165_v34  ;;  %vm915_vm2 = vcmp.eq.s32.totalorder %v3242_v14, %v3165_v34 }
  0xc4   : > { %v729_v42 = vpack.c.bf16 %v2504_v39, %v2502_v41  ;;  %2688 = vmatprep.mubr.msk.bf16.mxu1 %vm1110_vm4, %v1089_v38  ;;  %vm912_vm5 = vcmp.eq.s32.totalorder %v3226_v8, %v3155_v32  ;;  %vm910_vm6 = vcmp.eq.s32.totalorder %v3228_v9, %v3155_v32  ;;  %v2592_v62 = vsel %vm917_vm1, 1.0, %v2927_v40  ;;  %v1753_v8 = vld [vmem:[%s3161_s24 + $0xf0] sm:$0xff] }
  0xc5   : > { %v3304_v44 = vpop.permute.xlu1 %848  ;;  %v3306_v45 = vpop.permute.xlu0 %845  ;;  %v2590_v63 = vsel %vm915_vm2, 1.0, %v2927_v40  ;;  %v1922_v38 = vld [vmem:[%s3381_s6 + $0x30] sm:$0xff] }
  0xc6   : > { %2628 = vmatprep.mubr.msk.bf16.mxu0 %vm1110_vm4, %v729_v42  ;;  %1831 = vrot.lane.b32.xlu0 %v1745_v43, %s2926_s28  ;;  %v1093_v4 = vpack.c.bf16 %v2592_v62, %v2590_v63  ;;  %v1923_v42 = vld [vmem:[%s3381_s6 + $0x38] sm:$0xff]  ;;  %v1928_v62 = vld [vmem:[%s3381_s6 + $0x60] sm:$0xff] }
  0xc7   : > { %2630 = vmatmul.mubr.msk.bf16.gmra.mrb[4].mxu0 %vm2629_vm9, %v2928_v53  ;;  %1833 = vrot.lane.b32.xlu1 %v1746_v46, %s2926_s28  ;;  %vm2692_vm9 = vmpackc.low %vm912_vm5, %vm910_vm6 }
  0xc9   : > { %v455_v50 = vpop.permute.xlu1 %454  ;;  %v452_v51 = vpop.permute.xlu0 %451 }
  0xca   : > { %vm545_vm12 = vcmp.eq.s32.totalorder %v455_v50, %v3165_v34  ;;  %vm543_vm13 = vcmp.eq.s32.totalorder %v452_v51, %v3165_v34  ;;  %vm544_vm15 = vcmp.eq.s32.totalorder %v455_v50, %v3155_v32  ;;  %vm542_vm0 = vcmp.eq.s32.totalorder %v452_v51, %v3155_v32  ;;  %1835 = vrot.lane.b32.xlu0 %v1747_v49, %s2926_s28  ;;  %v1925_v50 = vld [vmem:[%s3381_s6 + $0x48] sm:$0xff] }
  0xcb   : > { %v2508_v55 = vsel %vm545_vm12, 1.0, %v2927_v40  ;;  %v2506_v56 = vsel %vm543_vm13, 1.0, %v2927_v40  ;;  %2690 = vmatmul.mubr.msk.bf16.gmra.mrb[20].mxu1 %vm2689_vm14, %v2928_v53  ;;  %1837 = vrot.lane.b32.xlu1 %v1748_v52, %s2926_s28  ;;  %vm2632_vm3 = vmpackc.low %vm544_vm15, %vm542_vm0  ;;  %vm921_vm12 = vcmp.eq.s32.totalorder %v3268_v27, %v3165_v34  ;;  %vm919_vm13 = vcmp.eq.s32.totalorder %v3270_v28, %v3165_v34 }
  0xcc   : > { %v731_v57 = vpack.c.bf16 %v2508_v55, %v2506_v56  ;;  %2691 = vmatprep.mubr.msk.bf16.mxu1 %vm1110_vm4, %v1091_v54  ;;  %vm916_vm15 = vcmp.eq.s32.totalorder %v3240_v13, %v3155_v32  ;;  %vm914_vm0 = vcmp.eq.s32.totalorder %v3242_v14, %v3155_v32  ;;  %v2596_v12 = vsel %vm921_vm12, 1.0, %v2927_v40  ;;  %v1926_v54 = vld [vmem:[%s3381_s6 + $0x50] sm:$0xff] }
  0xcd   : > { %v3338_v59 = vpop.permute.xlu1 %854  ;;  %v3340_v60 = vpop.permute.xlu0 %851  ;;  %v2594_v15 = vsel %vm919_vm13, 1.0, %v2927_v40 }
  0xce   : > { %2631 = vmatprep.mubr.msk.bf16.mxu0 %vm1110_vm4, %v731_v57  ;;  %1839 = vrot.lane.b32.xlu0 %v1749_v58, %s2926_s28  ;;  %v1095_v20 = vpack.c.bf16 %v2596_v12, %v2594_v15  ;;  %v1927_v57 = vld [vmem:[%s3381_s6 + $0x58] sm:$0xff]  ;;  %v1932_v12 = vld [vmem:[%s3381_s6 + $0x80] sm:$0xff] }
  0xcf   : > { %2633 = vmatmul.mubr.msk.bf16.gmra.mrb[8].mxu0 %vm2632_vm3, %v2928_v53  ;;  %1841 = vrot.lane.b32.xlu1 %v1750_v61, %s2926_s28  ;;  %vm2695_vm3 = vmpackc.low %vm916_vm15, %vm914_vm0 }
  0xd1   : > { %v461_v1 = vpop.permute.xlu1 %460  ;;  %v458_v2 = vpop.permute.xlu0 %457 }
  0xd2   : > { %vm549_vm7 = vcmp.eq.s32.totalorder %v461_v1, %v3165_v34  ;;  %vm547_vm8 = vcmp.eq.s32.totalorder %v458_v2, %v3165_v34  ;;  %vm548_vm10 = vcmp.eq.s32.totalorder %v461_v1, %v3155_v32  ;;  %vm546_vm11 = vcmp.eq.s32.totalorder %v458_v2, %v3155_v32  ;;  %1843 = vrot.lane.b32.xlu0 %v1751_v0, %s2926_s28  ;;  %v1929_v1 = vld [vmem:[%s3381_s6 + $0x68] sm:$0xff] }
  0xd3   : > { %v2512_v5 = vsel %vm549_vm7, 1.0, %v2927_v40  ;;  %v2510_v6 = vsel %vm547_vm8, 1.0, %v2927_v40  ;;  %2693 = vmatmul.mubr.msk.bf16.gmra.mrb[24].mxu1 %vm2692_vm9, %v2928_v53  ;;  %1845 = vrot.lane.b32.xlu1 %v1752_v3, %s2926_s28  ;;  %vm2635_vm14 = vmpackc.low %vm548_vm10, %vm546_vm11  ;;  %vm925_vm7 = vcmp.eq.s32.totalorder %v3304_v44, %v3165_v34  ;;  %vm923_vm8 = vcmp.eq.s32.totalorder %v3306_v45, %v3165_v34 }
  0xd4   : > { %v733_v7 = vpack.c.bf16 %v2512_v5, %v2510_v6  ;;  %2694 = vmatprep.mubr.msk.bf16.mxu1 %vm1110_vm4, %v1093_v4  ;;  %vm920_vm10 = vcmp.eq.s32.totalorder %v3268_v27, %v3155_v32  ;;  %vm918_vm11 = vcmp.eq.s32.totalorder %v3270_v28, %v3155_v32  ;;  %v2600_v26 = vsel %vm925_vm7, 1.0, %v2927_v40  ;;  %v1930_v4 = vld [vmem:[%s3381_s6 + $0x70] sm:$0xff] }
  0xd5   : > { %v3372_v9 = vpop.permute.xlu1 %860  ;;  %v3374_v10 = vpop.permute.xlu0 %857  ;;  %v2598_v29 = vsel %vm923_vm8, 1.0, %v2927_v40 }
  0xd6   : > { %2634 = vmatprep.mubr.msk.bf16.mxu0 %vm1110_vm4, %v733_v7  ;;  %1847 = vrot.lane.b32.xlu0 %v1753_v8, %s2926_s28  ;;  %v1097_v36 = vpack.c.bf16 %v2600_v26, %v2598_v29  ;;  %v1931_v7 = vld [vmem:[%s3381_s6 + $0x78] sm:$0xff] }
  0xd7   : > { %2636 = vmatmul.mubr.msk.bf16.gmra.mrb[12].mxu0 %vm2635_vm14, %v2928_v53  ;;  %1849 = vrot.lane.b32.xlu1 %v1754_v11, %s2926_s28  ;;  %vm2698_vm14 = vmpackc.low %vm920_vm10, %vm918_vm11 }
  0xd9   : > { %v467_v17 = vpop.permute.xlu1 %466  ;;  %v464_v18 = vpop.permute.xlu0 %463 }
  0xda   : > { %vm553_vm1 = vcmp.eq.s32.totalorder %v467_v17, %v3165_v34  ;;  %vm551_vm2 = vcmp.eq.s32.totalorder %v464_v18, %v3165_v34  ;;  %vm552_vm5 = vcmp.eq.s32.totalorder %v467_v17, %v3155_v32  ;;  %vm550_vm6 = vcmp.eq.s32.totalorder %v464_v18, %v3155_v32  ;;  %1980 = vrot.lane.b32.xlu0 %v1916_v16, %s2929_s16  ;;  %v1933_v17 = vld [vmem:[%s3381_s6 + $0x88] sm:$0xff] }
  0xdb   : > { %v2516_v13 = vsel %vm553_vm1, 1.0, %v2927_v40  ;;  %v2514_v14 = vsel %vm551_vm2, 1.0, %v2927_v40  ;;  %2696 = vmatmul.mubr.msk.bf16.gmra.mrb[28].mxu1 %vm2695_vm3, %v2928_v53  ;;  %1982 = vrot.lane.b32.xlu1 %v1917_v19, %s2929_s16  ;;  %vm2638_vm9 = vmpackc.low %vm552_vm5, %vm550_vm6  ;;  %vm929_vm1 = vcmp.eq.s32.totalorder %v3338_v59, %v3165_v34  ;;  %vm927_vm2 = vcmp.eq.s32.totalorder %v3340_v60, %v3165_v34 }
  0xdc   : > { %v735_v21 = vpack.c.bf16 %v2516_v13, %v2514_v14  ;;  %2697 = vmatprep.mubr.msk.bf16.mxu1 %vm1110_vm4, %v1095_v20  ;;  %vm924_vm5 = vcmp.eq.s32.totalorder %v3304_v44, %v3155_v32  ;;  %vm922_vm6 = vcmp.eq.s32.totalorder %v3306_v45, %v3155_v32  ;;  %v2604_v43 = vsel %vm929_vm1, 1.0, %v2927_v40  ;;  %v1934_v20 = vld [vmem:[%s3381_s6 + $0x90] sm:$0xff] }
  0xdd   : > { %v3414_v23 = vpop.permute.xlu1 %866  ;;  %v3416_v24 = vpop.permute.xlu0 %863  ;;  %v2602_v46 = vsel %vm927_vm2, 1.0, %v2927_v40 }
  0xde   : > { %2637 = vmatprep.mubr.msk.bf16.mxu0 %vm1110_vm4, %v735_v21  ;;  %1984 = vrot.lane.b32.xlu0 %v1918_v22, %s2929_s16  ;;  %v1099_v51 = vpack.c.bf16 %v2604_v43, %v2602_v46  ;;  %v1935_v21 = vld [vmem:[%s3381_s6 + $0x98] sm:$0xff] }
  0xdf   : > { %2639 = vmatmul.mubr.msk.bf16.gmra.mrb[16].mxu0 %vm2638_vm9, %v2928_v53  ;;  %1986 = vrot.lane.b32.xlu1 %v1919_v25, %s2929_s16  ;;  %vm2701_vm9 = vmpackc.low %vm924_vm5, %vm922_vm6 }
  0xe1   : > { %v473_v31 = vpop.permute.xlu1 %472  ;;  %v470_v33 = vpop.permute.xlu0 %469 }
  0xe2   : > { %vm557_vm12 = vcmp.eq.s32.totalorder %v473_v31, %v3165_v34  ;;  %vm555_vm13 = vcmp.eq.s32.totalorder %v470_v33, %v3165_v34  ;;  %vm556_vm15 = vcmp.eq.s32.totalorder %v473_v31, %v3155_v32  ;;  %vm554_vm0 = vcmp.eq.s32.totalorder %v470_v33, %v3155_v32  ;;  %1988 = vrot.lane.b32.xlu0 %v1920_v30, %s2929_s16  ;;  %v1936_v31 = vld [vmem:[%s3381_s6 + $0xa0] sm:$0xff] }
  0xe3   : > { %v2520_v27 = vsel %vm557_vm12, 1.0, %v2927_v40  ;;  %v2518_v28 = vsel %vm555_vm13, 1.0, %v2927_v40  ;;  %2699 = vmatmul.mubr.msk.bf16.gmra.mrb[32].mxu1 %vm2698_vm14, %v2928_v53  ;;  %1990 = vrot.lane.b32.xlu1 %v1921_v35, %s2929_s16  ;;  %vm2641_vm3 = vmpackc.low %vm556_vm15, %vm554_vm0  ;;  %vm933_vm12 = vcmp.eq.s32.totalorder %v3372_v9, %v3165_v34  ;;  %vm931_vm13 = vcmp.eq.s32.totalorder %v3374_v10, %v3165_v34 }
  0xe4   : > { %v737_v37 = vpack.c.bf16 %v2520_v27, %v2518_v28  ;;  %2700 = vmatprep.mubr.msk.bf16.mxu1 %vm1110_vm4, %v1097_v36  ;;  %vm928_vm15 = vcmp.eq.s32.totalorder %v3338_v59, %v3155_v32  ;;  %vm926_vm0 = vcmp.eq.s32.totalorder %v3340_v60, %v3155_v32  ;;  %v2608_v58 = vsel %vm933_vm12, 1.0, %v2927_v40  ;;  %v1937_v36 = vld [vmem:[%s3381_s6 + $0xa8] sm:$0xff] }
  0xe5   : > { %v3450_v39 = vpop.permute.xlu1 %872  ;;  %v3452_v41 = vpop.permute.xlu0 %869  ;;  %v2606_v61 = vsel %vm931_vm13, 1.0, %v2927_v40 }
  0xe6   : > { %2640 = vmatprep.mubr.msk.bf16.mxu0 %vm1110_vm4, %v737_v37  ;;  %1992 = vrot.lane.b32.xlu0 %v1922_v38, %s2929_s16  ;;  %v1101_v2 = vpack.c.bf16 %v2608_v58, %v2606_v61  ;;  %v1945_v61 = vld [vmem:[%s3381_s6 + $0xe8] sm:$0xff] }
  0xe7   : > { %2642 = vmatmul.mubr.msk.bf16.gmra.mrb[20].mxu0 %vm2641_vm3, %v2928_v53  ;;  %1994 = vrot.lane.b32.xlu1 %v1923_v42, %s2929_s16  ;;  %vm2704_vm3 = vmpackc.low %vm928_vm15, %vm926_vm0  ;;  %v1939_v42 = vld [vmem:[%s3381_s6 + $0xb8] sm:$0xff] }
  0xe9   : > { %v479_v48 = vpop.permute.xlu1 %478  ;;  %v476_v49 = vpop.permute.xlu0 %475 }
  0xea   : > { %vm561_vm7 = vcmp.eq.s32.totalorder %v479_v48, %v3165_v34  ;;  %vm559_vm8 = vcmp.eq.s32.totalorder %v476_v49, %v3165_v34  ;;  %vm560_vm10 = vcmp.eq.s32.totalorder %v479_v48, %v3155_v32  ;;  %vm558_vm11 = vcmp.eq.s32.totalorder %v476_v49, %v3155_v32  ;;  %1996 = vrot.lane.b32.xlu0 %v1924_v47, %s2929_s16  ;;  %v1941_v48 = vld [vmem:[%s3381_s6 + $0xc8] sm:$0xff] }
  0xeb   : > { %v2524_v44 = vsel %vm561_vm7, 1.0, %v2927_v40  ;;  %v2522_v45 = vsel %vm559_vm8, 1.0, %v2927_v40  ;;  %2702 = vmatmul.mubr.msk.bf16.gmra.mrb[36].mxu1 %vm2701_vm9, %v2928_v53  ;;  %1998 = vrot.lane.b32.xlu1 %v1925_v50, %s2929_s16  ;;  %vm2644_vm14 = vmpackc.low %vm560_vm10, %vm558_vm11  ;;  %vm937_vm7 = vcmp.eq.s32.totalorder %v3414_v23, %v3165_v34  ;;  %vm935_vm8 = vcmp.eq.s32.totalorder %v3416_v24, %v3165_v34 }
  0xec   : > { %v739_v52 = vpack.c.bf16 %v2524_v44, %v2522_v45  ;;  %2703 = vmatprep.mubr.msk.bf16.mxu1 %vm1110_vm4, %v1099_v51  ;;  %vm932_vm10 = vcmp.eq.s32.totalorder %v3372_v9, %v3155_v32  ;;  %vm930_vm11 = vcmp.eq.s32.totalorder %v3374_v10, %v3155_v32  ;;  %v2612_v8 = vsel %vm937_vm7, 1.0, %v2927_v40  ;;  %v1942_v51 = vld [vmem:[%s3381_s6 + $0xd0] sm:$0xff] }
  0xed   : > { %v3484_v55 = vpop.permute.xlu1 %878  ;;  %v3486_v56 = vpop.permute.xlu0 %875  ;;  %v2610_v11 = vsel %vm935_vm8, 1.0, %v2927_v40 }
  0xee   : > { %2643 = vmatprep.mubr.msk.bf16.mxu0 %vm1110_vm4, %v739_v52  ;;  %2000 = vrot.lane.b32.xlu0 %v1926_v54, %s2929_s16  ;;  %v1103_v18 = vpack.c.bf16 %v2612_v8, %v2610_v11  ;;  %v1943_v52 = vld [vmem:[%s3381_s6 + $0xd8] sm:$0xff] }
  0xef   : > { %2645 = vmatmul.mubr.msk.bf16.gmra.mrb[24].mxu0 %vm2644_vm14, %v2928_v53  ;;  %2002 = vrot.lane.b32.xlu1 %v1927_v57, %s2929_s16  ;;  %vm2707_vm14 = vmpackc.low %vm932_vm10, %vm930_vm11 }
  0xf1   : > { %v485_v63 = vpop.permute.xlu1 %484  ;;  %v482_v0 = vpop.permute.xlu0 %481 }
  0xf2   : > { %vm565_vm1 = vcmp.eq.s32.totalorder %v485_v63, %v3165_v34  ;;  %vm563_vm2 = vcmp.eq.s32.totalorder %v482_v0, %v3165_v34  ;;  %vm564_vm5 = vcmp.eq.s32.totalorder %v485_v63, %v3155_v32  ;;  %vm562_vm6 = vcmp.eq.s32.totalorder %v482_v0, %v3155_v32  ;;  %2004 = vrot.lane.b32.xlu0 %v1928_v62, %s2929_s16 }
  0xf3   : > { %v2528_v59 = vsel %vm565_vm1, 1.0, %v2927_v40  ;;  %v2526_v60 = vsel %vm563_vm2, 1.0, %v2927_v40  ;;  %2705 = vmatmul.mubr.msk.bf16.gmra.mrb[40].mxu1 %vm2704_vm3, %v2928_v53  ;;  %2006 = vrot.lane.b32.xlu1 %v1929_v1, %s2929_s16  ;;  %vm2647_vm9 = vmpackc.low %vm564_vm5, %vm562_vm6  ;;  %vm941_vm1 = vcmp.eq.s32.totalorder %v3450_v39, %v3165_v34  ;;  %vm939_vm2 = vcmp.eq.s32.totalorder %v3452_v41, %v3165_v34 }
  0xf4   : > { %v741_v3 = vpack.c.bf16 %v2528_v59, %v2526_v60  ;;  %2706 = vmatprep.mubr.msk.bf16.mxu1 %vm1110_vm4, %v1101_v2  ;;  %vm936_vm3 = vcmp.eq.s32.totalorder %v3414_v23, %v3155_v32  ;;  %vm934_vm5 = vcmp.eq.s32.totalorder %v3416_v24, %v3155_v32  ;;  %v2616_v22 = vsel %vm941_vm1, 1.0, %v2927_v40  ;;  %v1938_v23 = vld [vmem:[%s3381_s6 + $0xb0] sm:$0xff] }
  0xf5   : > { %v3518_v5 = vpop.permute.xlu1 %884  ;;  %v3520_v6 = vpop.permute.xlu0 %881  ;;  %v2614_v25 = vsel %vm939_vm2, 1.0, %v2927_v40  ;;  %vm2710_vm11 = vmpackc.low %vm936_vm3, %vm934_vm5  ;;  %vm940_vm1 = vcmp.eq.s32.totalorder %v3450_v39, %v3155_v32  ;;  %vm938_vm2 = vcmp.eq.s32.totalorder %v3452_v41, %v3155_v32  ;;  %v1940_v39 = vld [vmem:[%s3381_s6 + $0xc0] sm:$0xff] }
  0xf6   : > { %2646 = vmatprep.mubr.msk.bf16.mxu0 %vm1110_vm4, %v741_v3  ;;  %2008 = vrot.lane.b32.xlu0 %v1930_v4, %s2929_s16  ;;  %v1105_v27 = vpack.c.bf16 %v2616_v22, %v2614_v25 }
  0xf7   : > { %2648 = vmatmul.mubr.msk.bf16.gmra.mrb[28].mxu0 %vm2647_vm9, %v2928_v53  ;;  %2010 = vrot.lane.b32.xlu1 %v1931_v7, %s2929_s16 }
  0xf9   : > { %v491_v15 = vpop.permute.xlu1 %490  ;;  %v488_v16 = vpop.permute.xlu0 %487 }
  0xfa   : > { %vm569_vm12 = vcmp.eq.s32.totalorder %v491_v15, %v3165_v34  ;;  %vm567_vm13 = vcmp.eq.s32.totalorder %v488_v16, %v3165_v34  ;;  %vm568_vm15 = vcmp.eq.s32.totalorder %v491_v15, %v3155_v32  ;;  %vm566_vm0 = vcmp.eq.s32.totalorder %v488_v16, %v3155_v32  ;;  %2012 = vrot.lane.b32.xlu0 %v1932_v12, %s2929_s16 }
  0xfb   : > { %v2532_v9 = vsel %vm569_vm12, 1.0, %v2927_v40  ;;  %v2530_v10 = vsel %vm567_vm13, 1.0, %v2927_v40  ;;  %2708 = vmatmul.mubr.msk.bf16.gmra.mrb[44].mxu1 %vm2707_vm14, %v2928_v53  ;;  %2014 = vrot.lane.b32.xlu1 %v1933_v17, %s2929_s16  ;;  %vm2650_vm8 = vmpackc.low %vm568_vm15, %vm566_vm0  ;;  %vm945_vm14 = vcmp.eq.s32.totalorder %v3484_v55, %v3165_v34  ;;  %vm943_vm15 = vcmp.eq.s32.totalorder %v3486_v56, %v3165_v34 }
  0xfc   : > { %v743_v19 = vpack.c.bf16 %v2532_v9, %v2530_v10  ;;  %2709 = vmatprep.mubr.msk.bf16.mxu1 %vm1110_vm4, %v1103_v18  ;;  %v2620_v46 = vsel %vm945_vm14, 1.0, %v2927_v40  ;;  %v2618_v47 = vsel %vm943_vm15, 1.0, %v2927_v40 }
  0xfd   : > { %v497_v13 = vpop.permute.xlu1 %496  ;;  %v494_v14 = vpop.permute.xlu0 %493  ;;  %v1107_v41 = vpack.c.bf16 %v2620_v46, %v2618_v47 }
  0xfe   : > { %vm573_vm6 = vcmp.eq.s32.totalorder %v497_v13, %v3165_v34  ;;  %vm571_vm7 = vcmp.eq.s32.totalorder %v494_v14, %v3165_v34  ;;  %2649 = vmatprep.mubr.msk.bf16.mxu0 %vm1110_vm4, %v743_v19  ;;  %2016 = vrot.lane.b32.xlu0 %v1934_v20, %s2929_s16  ;;  %vm572_vm12 = vcmp.eq.s32.totalorder %v497_v13, %v3155_v32 }
  0xff   : > { %v2536_v26 = vsel %vm573_vm6, 1.0, %v2927_v40  ;;  %v2534_v29 = vsel %vm571_vm7, 1.0, %v2927_v40  ;;  %2651 = vmatmul.mubr.msk.bf16.gmra.mrb[32].mxu0 %vm2650_vm8, %v2928_v53  ;;  %2018 = vrot.lane.b32.xlu1 %v1935_v21, %s2929_s16  ;;  %vm570_vm13 = vcmp.eq.s32.totalorder %v494_v14, %v3155_v32  ;;  %vm2713_vm6 = vmpackc.low %vm940_vm1, %vm938_vm2 }
 0x100   : > { %v745_v30 = vpack.c.bf16 %v2536_v26, %v2534_v29  ;;  %vm2653_vm0 = vmpackc.low %vm572_vm12, %vm570_vm13  ;;  %vm944_vm12 = vcmp.eq.s32.totalorder %v3484_v55, %v3155_v32  ;;  %vm942_vm13 = vcmp.eq.s32.totalorder %v3486_v56, %v3155_v32  ;;  %v1944_v55 = vld [vmem:[%s3381_s6 + $0xe0] sm:$0xff] }
 0x101   : > { %v503_v33 = vpop.permute.xlu1 %502  ;;  %v500_v35 = vpop.permute.xlu0 %499 }
 0x102   : > { %vm577_vm9 = vcmp.eq.s32.totalorder %v503_v33, %v3165_v34  ;;  %vm575_vm10 = vcmp.eq.s32.totalorder %v500_v35, %v3165_v34  ;;  %2652 = vmatprep.mubr.msk.bf16.mxu0 %vm1110_vm4, %v745_v30  ;;  %2020 = vrot.lane.b32.xlu0 %v1936_v31, %s2929_s16  ;;  %vm576_vm7 = vcmp.eq.s32.totalorder %v503_v33, %v3155_v32 }
 0x103   : > { %v2540_v28 = vsel %vm577_vm9, 1.0, %v2927_v40  ;;  %v2538_v37 = vsel %vm575_vm10, 1.0, %v2927_v40  ;;  %2711 = vmatmul.mubr.msk.bf16.gmra.mrb[48].mxu1 %vm2710_vm11, %v2928_v53  ;;  %2022 = vrot.lane.b32.xlu1 %v1937_v36, %s2929_s16  ;;  %vm574_vm8 = vcmp.eq.s32.totalorder %v500_v35, %v3155_v32  ;;  %vm949_vm9 = vcmp.eq.s32.totalorder %v3518_v5, %v3165_v34 }
 0x104   : > { %2712 = vmatprep.mubr.msk.bf16.mxu1 %vm1110_vm4, %v1105_v27  ;;  %v747_v43 = vpack.c.bf16 %v2540_v28, %v2538_v37  ;;  %vm947_vm10 = vcmp.eq.s32.totalorder %v3520_v6, %v3165_v34  ;;  %vm2656_vm11 = vmpackc.low %vm576_vm7, %vm574_vm8  ;;  %v2624_v57 = vsel %vm949_vm9, 1.0, %v2927_v40 }
 0x105   : > { %v509_v24 = vpop.permute.xlu1 %508  ;;  %v506_v38 = vpop.permute.xlu0 %505  ;;  %v2622_v58 = vsel %vm947_vm10, 1.0, %v2927_v40 }
 0x106   : > { %2024 = vrot.lane.b32.xlu0 %v1938_v23, %s2929_s16  ;;  %vm581_vm3 = vcmp.eq.s32.totalorder %v509_v24, %v3165_v34  ;;  %vm579_vm5 = vcmp.eq.s32.totalorder %v506_v38, %v3165_v34  ;;  %v1109_v62 = vpack.c.bf16 %v2624_v57, %v2622_v58  ;;  %vm580_vm1 = vcmp.eq.s32.totalorder %v509_v24, %v3155_v32 }
 0x107   : > { %2654 = vmatmul.mubr.msk.bf16.gmra.mrb[36].mxu0 %vm2653_vm0, %v2928_v53  ;;  %2026 = vrot.lane.b32.xlu1 %v1939_v42, %s2929_s16  ;;  %v2544_v49 = vsel %vm581_vm3, 1.0, %v2927_v40  ;;  %v2542_v50 = vsel %vm579_vm5, 1.0, %v2927_v40  ;;  %vm2716_vm0 = vmpackc.low %vm944_vm12, %vm942_vm13  ;;  %vm578_vm2 = vcmp.eq.s32.totalorder %v506_v38, %v3155_v32  ;;  %vm948_vm5 = vcmp.eq.s32.totalorder %v3518_v5, %v3155_v32 }
 0x108   : > { %2655 = vmatprep.mubr.msk.bf16.mxu0 %vm1110_vm4, %v747_v43  ;;  %v749_v54 = vpack.c.bf16 %v2544_v49, %v2542_v50  ;;  %vm2659_vm3 = vmpackc.low %vm580_vm1, %vm578_vm2 }
 0x109   : > { %v515_v44 = vpop.permute.xlu1 %514  ;;  %v512_v45 = vpop.permute.xlu0 %511 }
 0x10a   : > { %2028 = vrot.lane.b32.xlu0 %v1940_v39, %s2929_s16  ;;  %vm585_vm14 = vcmp.eq.s32.totalorder %v515_v44, %v3165_v34  ;;  %vm583_vm15 = vcmp.eq.s32.totalorder %v512_v45, %v3165_v34  ;;  %vm584_vm10 = vcmp.eq.s32.totalorder %v515_v44, %v3155_v32 }
 0x10b   : > { %2714 = vmatmul.mubr.msk.bf16.gmra.mrb[52].mxu1 %vm2713_vm6, %v2928_v53  ;;  %2030 = vrot.lane.b32.xlu1 %v1941_v48, %s2929_s16  ;;  %v2548_v56 = vsel %vm585_vm14, 1.0, %v2927_v40  ;;  %v2546_v63 = vsel %vm583_vm15, 1.0, %v2927_v40  ;;  %vm946_vm6 = vcmp.eq.s32.totalorder %v3520_v6, %v3155_v32 }
 0x10c   : > { %2715 = vmatprep.mubr.msk.bf16.mxu1 %vm1110_vm4, %v1107_v41  ;;  %v751_v2 = vpack.c.bf16 %v2548_v56, %v2546_v63  ;;  %vm2719_vm9 = vmpackc.low %vm948_vm5, %vm946_vm6 }
 0x10d   : > { %v521_v0 = vpop.permute.xlu1 %520  ;;  %v518_v1 = vpop.permute.xlu0 %517 }
 0x10e   : > { %2032 = vrot.lane.b32.xlu0 %v1942_v51, %s2929_s16  ;;  %vm589_vm7 = vcmp.eq.s32.totalorder %v521_v0, %v3165_v34  ;;  %vm587_vm8 = vcmp.eq.s32.totalorder %v518_v1, %v3165_v34  ;;  %vm588_vm15 = vcmp.eq.s32.totalorder %v521_v0, %v3155_v32 }
 0x10f   : > { %2657 = vmatmul.mubr.msk.bf16.gmra.mrb[40].mxu0 %vm2656_vm11, %v2928_v53  ;;  %2034 = vrot.lane.b32.xlu1 %v1943_v52, %s2929_s16  ;;  %vm582_vm11 = vcmp.eq.s32.totalorder %v512_v45, %v3155_v32  ;;  %v2552_v59 = vsel %vm589_vm7, 1.0, %v2927_v40  ;;  %v2550_v60 = vsel %vm587_vm8, 1.0, %v2927_v40 }
 0x110   : > { %2658 = vmatprep.mubr.msk.bf16.mxu0 %vm1110_vm4, %v749_v54  ;;  %v753_v5 = vpack.c.bf16 %v2552_v59, %v2550_v60  ;;  %vm2662_vm12 = vmpackc.low %vm584_vm10, %vm582_vm11  ;;  %vm1690_vm11 = vcmask 359600  }
 0x111   : > { %v527_v3 = vpop.permute.xlu1 %526  ;;  %v524_v4 = vpop.permute.xlu0 %523 }
 0x112   : > { %2036 = vrot.lane.b32.xlu0 %v1944_v55, %s2929_s16  ;;  %vm593_vm13 = vcmp.eq.s32.totalorder %v527_v3, %v3165_v34  ;;  %vm591_vm14 = vcmp.eq.s32.totalorder %v524_v4, %v3165_v34  ;;  %vm592_vm5 = vcmp.eq.s32.totalorder %v527_v3, %v3155_v32  ;;  %vm590_vm6 = vcmp.eq.s32.totalorder %v524_v4, %v3155_v32 }
 0x113   : > { %2717 = vmatmul.mubr.msk.bf16.gmra.mrb[56].mxu1 %vm2716_vm0, %v2928_v53  ;;  %2038 = vrot.lane.b32.xlu1 %v1945_v61, %s2929_s16  ;;  %vm586_vm0 = vcmp.eq.s32.totalorder %v518_v1, %v3155_v32  ;;  %v2556_v6 = vsel %vm593_vm13, 1.0, %v2927_v40  ;;  %v2554_v7 = vsel %vm591_vm14, 1.0, %v2927_v40  ;;  %vm2668_vm7 = vmpackc.low %vm592_vm5, %vm590_vm6  ;;  %vm2076_vm13 = vcmask 499168  }
 0x114   : > { %2718 = vmatprep.mubr.msk.bf16.mxu1 %vm1110_vm4, %v1109_v62  ;;  %v755_v12 = vpack.c.bf16 %v2556_v6, %v2554_v7  ;;  %vm2665_vm1 = vmpackc.low %vm588_vm15, %vm586_vm0 }
 0x115   : > { %v533_v8 = vpop.permute.xlu1 %532  ;;  %v530_v11 = vpop.permute.xlu0 %529 }
 0x116   : > { %vm597_vm2 = vcmp.eq.s32.totalorder %v533_v8, %v3165_v34  ;;  %vm596_vm8 = vcmp.eq.s32.totalorder %v533_v8, %v3155_v32 }
 0x117   : > { %2660 = vmatmul.mubr.msk.bf16.gmra.mrb[44].mxu0 %vm2659_vm3, %v2928_v53  ;;  %vm595_vm3 = vcmp.eq.s32.totalorder %v530_v11, %v3165_v34  ;;  %v2560_v15 = vsel %vm597_vm2, 1.0, %v2927_v40 }
 0x118   : > { %2661 = vmatprep.mubr.msk.bf16.mxu0 %vm1110_vm4, %v751_v2  ;;  %v2558_v16 = vsel %vm595_vm3, 1.0, %v2927_v40 }
 0x119   : > { %v757_v17 = vpack.c.bf16 %v2560_v15, %v2558_v16  ;;  %v3683_v18 = vpop.permute.xlu0 %1787  ;;  %v3686_v9 = vpop.permute.xlu1 %1789 }
 0x11b   : > { %2720 = vmatmul.mubr.msk.bf16.gmra.mrb[60].mxu1 %vm2719_vm9, %v2928_v53  ;;  %vm594_vm9 = vcmp.eq.s32.totalorder %v530_v11, %v3155_v32 }
 0x11c   : > { %vm2671_vm10 = vmpackc.low %vm596_vm8, %vm594_vm9 }
 0x11d   : > { %v3690_v34 = vpop.permute.xlu0 %1791  ;;  %v3693_v40 = vpop.permute.xlu1 %1793 }
 0x11f   : > { %2663 = vmatmul.mubr.msk.bf16.gmra.mrb[48].mxu0 %vm2662_vm12, %v2928_v53  ;;  %vm1883_vm12 = vcmask 490848  }
 0x120   : > { %2664 = vmatprep.mubr.msk.bf16.mxu0 %vm1110_vm4, %v753_v5 }
 0x121   : > { %v3695_v10 = vpop.permute.xlu0 %1795  ;;  %v3697_v19 = vpop.permute.xlu1 %1797 }
 0x125   : > { %v3699_v20 = vpop.permute.xlu0 %1799  ;;  %v3701_v13 = vpop.permute.xlu1 %1801 }
 0x127   : > { %2666 = vmatmul.mubr.msk.bf16.gmra.mrb[52].mxu0 %vm2665_vm1, %v2928_v53 }
 0x128   : > { %2667 = vmatprep.mubr.msk.bf16.mxu0 %vm1110_vm4, %v755_v12 }
 0x129   : > { %v3703_v14 = vpop.permute.xlu0 %1803  ;;  %v3705_v21 = vpop.permute.xlu1 %1805 }
 0x12d   : > { %v3707_v32 = vpop.permute.xlu0 %1807  ;;  %v3709_v22 = vpop.permute.xlu1 %1809 }
 0x12f   : > { %2669 = vmatmul.mubr.msk.bf16.gmra.mrb[56].mxu0 %vm2668_vm7, %v2928_v53 }
 0x130   : > { %2670 = vmatprep.mubr.msk.bf16.mxu0 %vm1110_vm4, %v757_v17  ;;  %vm1529_vm4 = vcmask 179200  }
 0x131   : > { %v3711_v25 = vpop.permute.xlu0 %1811 }
 0x135   : > { %v3715_v26 = vpop.permute.xlu0 %1815 }
 0x137   : > { %2672 = vmatmul.mubr.msk.bf16.gmra.mrb[60].mxu0 %vm2671_vm10, %v2928_v53  ;;  %v3713_v53 = vpop.permute.xlu1 %1813 }
 0x139   : > { %v3719_v30 = vpop.permute.xlu0 %1819 }
 0x13b   : > { %v3717_v29 = vpop.permute.xlu1 %1817 }
 0x13d   : > { %v3723_v33 = vpop.permute.xlu0 %1823 }
 0x13f   : > { %v3721_v31 = vpop.permute.xlu1 %1821 }
 0x141   : > { %v3727_v36 = vpop.permute.xlu0 %1827 }
 0x143   : > { %v3725_v35 = vpop.permute.xlu1 %1825 }
 0x145   : > { %v3731_v28 = vpop.permute.xlu0 %1831 }
 0x147   : > { %v3729_v27 = vpop.permute.xlu1 %1829 }
 0x149   : > { %v3736_v38 = vpop.permute.xlu0 %1835 }
 0x14b   : > { %v3733_v37 = vpop.permute.xlu1 %1833 }
 0x14d   : > { %v3741_v47 = vpop.permute.xlu0 %1839 }
 0x14f   : > { %v3739_v46 = vpop.permute.xlu1 %1837 }
 0x151   : > { %v3747_v51 = vpop.permute.xlu0 %1843 }
 0x152   : > { %4315 = vst [vmem:[#allocation4_spill] sm:$0xff] %v3747_v51 }
 0x153   : > { %v3744_v41 = vpop.permute.xlu1 %1841 }
 0x154   : > { %4314 = vst [vmem:[#allocation3_spill] sm:$0xff] %v3744_v41 }
 0x155   : > { %v3753_v58 = vpop.permute.xlu0 %1847 }
 0x156   : > { %4317 = vst [vmem:[#allocation6_spill] sm:$0xff] %v3753_v58 }
 0x157   : > { %v3749_v44 = vpop.permute.xlu1 %1845 }
 0x158   : > { %4316 = vst [vmem:[#allocation5_spill] sm:$0xff] %v3749_v44 }
 0x159   : > { %v3759_v56 = vpop.permute.xlu0 %1980 }
 0x15b   : > { %v3756_v55 = vpop.permute.xlu1 %1849 }
 0x15c   : > { %4318 = vst [vmem:[#allocation7_spill] sm:$0xff] %v3756_v55 }
 0x15d   : > { %v3770_v4 = vpop.permute.xlu0 %1984 }
 0x15f   : > { %v3762_v1 = vpop.permute.xlu1 %1982 }
 0x161   : > { %v3778_v16 = vpop.permute.xlu0 %1988 }
 0x163   : > { %v3773_v7 = vpop.permute.xlu1 %1986 }
 0x176   : > { %v1402_v23 = vpop.f32.mrb[0].mxu1 }
 0x177   : > { %v1404_v24 = vpop.f32.mrb[1].mxu1  ;;  %1594 = vrot.lane.b32.xlu0 %v1402_v23, %s2930_s7 }
 0x178   : > { %v1405_v42 = vpop.f32.mrb[2].mxu1  ;;  %v3782_v24 = vpop.permute.xlu1 %1990 }
 0x179   : > { %v1407_v43 = vpop.f32.mrb[3].mxu1  ;;  %1596 = vrot.lane.b32.xlu1 %v1405_v42, %s2930_s7 }
 0x17e   : > { %v1410_v39 = vpop.f32.mrb[4].mxu1 }
 0x17f   : > { %v1412_v48 = vpop.f32.mrb[5].mxu1  ;;  %1598 = vrot.lane.b32.xlu0 %v1410_v39, %s2930_s7 }
 0x180   : > { %v1413_v49 = vpop.f32.mrb[6].mxu1 }
 0x181   : > { %v1415_v50 = vpop.f32.mrb[7].mxu1  ;;  %1600 = vrot.lane.b32.xlu1 %v1413_v49, %s2930_s7  ;;  %v3786_v49 = vpop.permute.xlu0 %1992 }
 0x186   : > { %v1418_v45 = vpop.f32.mrb[8].mxu1 }
 0x187   : > { %v1420_v52 = vpop.f32.mrb[9].mxu1  ;;  %1602 = vrot.lane.b32.xlu0 %v1418_v45, %s2930_s7 }
 0x188   : > { %v1421_v54 = vpop.f32.mrb[10].mxu1  ;;  %v3790_v52 = vpop.permute.xlu1 %1994 }
 0x189   : > { %v1423_v57 = vpop.f32.mrb[11].mxu1  ;;  %1604 = vrot.lane.b32.xlu1 %v1421_v54, %s2930_s7 }
 0x18e   : > { %v1426_v61 = vpop.f32.mrb[12].mxu1 }
 0x18f   : > { %v1428_v62 = vpop.f32.mrb[13].mxu1  ;;  %1606 = vrot.lane.b32.xlu0 %v1426_v61, %s2930_s7 }
 0x190   : > { %v1429_v63 = vpop.f32.mrb[14].mxu1 }
 0x191   : > { %v1431_v0 = vpop.f32.mrb[15].mxu1  ;;  %1608 = vrot.lane.b32.xlu1 %v1429_v63, %s2930_s7  ;;  %v3795_v63 = vpop.permute.xlu0 %1996 }
 0x192   : > { %v1193_v2 = vpop.f32.mrb[0].mxu0 }
 0x193   : > { %1530 = vst.msk [vmem:[%s3764_s10] sm:$0xff] %vm1529_vm4, %v1193_v2  ;;  %v1195_v59 = vpop.f32.mrb[1].mxu0 }
 0x194   : > { %v1196_v60 = vpop.f32.mrb[2].mxu0  ;;  %v3798_v59 = vpop.permute.xlu1 %1998 }
 0x195   : > { %1531 = vst.msk [vmem:[%s3764_s10 + $0x8] sm:$0xff] %vm1529_vm4, %v1196_v60  ;;  %v1198_v3 = vpop.f32.mrb[3].mxu0 }
 0x196   : > { %v1434_v5 = vpop.f32.mrb[16].mxu1 }
 0x197   : > { %v1436_v6 = vpop.f32.mrb[17].mxu1  ;;  %1610 = vrot.lane.b32.xlu0 %v1434_v5, %s2930_s7 }
 0x198   : > { %v1437_v8 = vpop.f32.mrb[18].mxu1 }
 0x199   : > { %v1439_v11 = vpop.f32.mrb[19].mxu1  ;;  %1612 = vrot.lane.b32.xlu1 %v1437_v8, %s2930_s7  ;;  %v3804_v8 = vpop.permute.xlu0 %2000 }
 0x19a   : > { %v1201_v12 = vpop.f32.mrb[4].mxu0 }
 0x19b   : > { %1532 = vst.msk [vmem:[%s3764_s10 + $0x10] sm:$0xff] %vm1529_vm4, %v1201_v12  ;;  %v1203_v15 = vpop.f32.mrb[5].mxu0 }
 0x19c   : > { %v1204_v17 = vpop.f32.mrb[6].mxu0  ;;  %v3807_v15 = vpop.permute.xlu1 %2002 }
 0x19d   : > { %1533 = vst.msk [vmem:[%s3764_s10 + $0x18] sm:$0xff] %vm1529_vm4, %v1204_v17  ;;  %v1206_v23 = vpop.f32.mrb[7].mxu0 }
 0x19e   : > { %v1442_v42 = vpop.f32.mrb[20].mxu1 }
 0x19f   : > { %v1444_v43 = vpop.f32.mrb[21].mxu1  ;;  %1614 = vrot.lane.b32.xlu0 %v1442_v42, %s2930_s7 }
 0x1a0   : > { %v1445_v39 = vpop.f32.mrb[22].mxu1 }
 0x1a1   : > { %v1447_v48 = vpop.f32.mrb[23].mxu1  ;;  %1616 = vrot.lane.b32.xlu1 %v1445_v39, %s2930_s7  ;;  %v3812_v39 = vpop.permute.xlu0 %2004 }
 0x1a2   : > { %v1209_v50 = vpop.f32.mrb[8].mxu0 }
 0x1a3   : > { %1534 = vst.msk [vmem:[%s3764_s10 + $0x20] sm:$0xff] %vm1529_vm4, %v1209_v50  ;;  %v1211_v45 = vpop.f32.mrb[9].mxu0 }
 0x1a4   : > { %v1212_v54 = vpop.f32.mrb[10].mxu0  ;;  %v3816_v45 = vpop.permute.xlu1 %2006 }
 0x1a5   : > { %1535 = vst.msk [vmem:[%s3764_s10 + $0x28] sm:$0xff] %vm1529_vm4, %v1212_v54  ;;  %v1214_v57 = vpop.f32.mrb[11].mxu0 }
 0x1a6   : > { %v1450_v61 = vpop.f32.mrb[24].mxu1 }
 0x1a7   : > { %v1452_v62 = vpop.f32.mrb[25].mxu1  ;;  %1618 = vrot.lane.b32.xlu0 %v1450_v61, %s2930_s7 }
 0x1a8   : > { %v1453_v0 = vpop.f32.mrb[26].mxu1 }
 0x1a9   : > { %v1455_v2 = vpop.f32.mrb[27].mxu1  ;;  %1620 = vrot.lane.b32.xlu1 %v1453_v0, %s2930_s7  ;;  %v3820_v0 = vpop.permute.xlu0 %2008 }
 0x1aa   : > { %v1217_v60 = vpop.f32.mrb[12].mxu0 }
 0x1ab   : > { %1536 = vst.msk [vmem:[%s3764_s10 + $0x30] sm:$0xff] %vm1529_vm4, %v1217_v60  ;;  %v1219_v3 = vpop.f32.mrb[13].mxu0 }
 0x1ac   : > { %v1220_v5 = vpop.f32.mrb[14].mxu0  ;;  %v3824_v3 = vpop.permute.xlu1 %2010 }
 0x1ad   : > { %1537 = vst.msk [vmem:[%s3764_s10 + $0x38] sm:$0xff] %vm1529_vm4, %v1220_v5  ;;  %v1222_v6 = vpop.f32.mrb[15].mxu0 }
 0x1ae   : > { %v1458_v11 = vpop.f32.mrb[28].mxu1 }
 0x1af   : > { %v1460_v12 = vpop.f32.mrb[29].mxu1  ;;  %1622 = vrot.lane.b32.xlu0 %v1458_v11, %s2930_s7 }
 0x1b0   : > { %v1461_v17 = vpop.f32.mrb[30].mxu1 }
 0x1b1   : > { %v1463_v23 = vpop.f32.mrb[31].mxu1  ;;  %1624 = vrot.lane.b32.xlu1 %v1461_v17, %s2930_s7  ;;  %v3829_v17 = vpop.permute.xlu0 %2012 }
 0x1b2   : > { %v1225_v42 = vpop.f32.mrb[16].mxu0 }
 0x1b3   : > { %1538 = vst.msk [vmem:[%s3764_s10 + $0x40] sm:$0xff] %vm1529_vm4, %v1225_v42  ;;  %v1227_v43 = vpop.f32.mrb[17].mxu0 }
 0x1b4   : > { %v1228_v48 = vpop.f32.mrb[18].mxu0  ;;  %v3832_v43 = vpop.permute.xlu1 %2014 }
 0x1b5   : > { %1539 = vst.msk [vmem:[%s3764_s10 + $0x48] sm:$0xff] %vm1529_vm4, %v1228_v48  ;;  %v1230_v50 = vpop.f32.mrb[19].mxu0 }
 0x1b6   : > { %v1466_v54 = vpop.f32.mrb[32].mxu1 }
 0x1b7   : > { %v1468_v57 = vpop.f32.mrb[33].mxu1  ;;  %1626 = vrot.lane.b32.xlu0 %v1466_v54, %s2930_s7 }
 0x1b8   : > { %v1469_v61 = vpop.f32.mrb[34].mxu1 }
 0x1b9   : > { %1628 = vrot.lane.b32.xlu1 %v1469_v61, %s2930_s7  ;;  %v1471_v62 = vpop.f32.mrb[35].mxu1  ;;  %v3838_v61 = vpop.permute.xlu0 %2016 }
 0x1ba   : > { %v1233_v2 = vpop.f32.mrb[20].mxu0 }
 0x1bb   : > { %1540 = vst.msk [vmem:[%s3764_s10 + $0x50] sm:$0xff] %vm1529_vm4, %v1233_v2  ;;  %v1235_v60 = vpop.f32.mrb[21].mxu0 }
 0x1bc   : > { %v1236_v5 = vpop.f32.mrb[22].mxu0  ;;  %v3841_v60 = vpop.permute.xlu1 %2018 }
 0x1bd   : > { %1541 = vst.msk [vmem:[%s3764_s10 + $0x58] sm:$0xff] %vm1529_vm4, %v1236_v5  ;;  %v1238_v6 = vpop.f32.mrb[23].mxu0 }
 0x1be   : > { %v1474_v11 = vpop.f32.mrb[36].mxu1 }
 0x1bf   : > { %v1476_v12 = vpop.f32.mrb[37].mxu1  ;;  %1630 = vrot.lane.b32.xlu0 %v1474_v11, %s2930_s7 }
 0x1c0   : > { %v1477_v23 = vpop.f32.mrb[38].mxu1 }
 0x1c1   : > { %1632 = vrot.lane.b32.xlu1 %v1477_v23, %s2930_s7  ;;  %v1479_v42 = vpop.f32.mrb[39].mxu1  ;;  %v3846_v23 = vpop.permute.xlu0 %2020 }
 0x1c2   : > { %v1241_v48 = vpop.f32.mrb[24].mxu0 }
 0x1c3   : > { %1542 = vst.msk [vmem:[%s3764_s10 + $0x60] sm:$0xff] %vm1529_vm4, %v1241_v48  ;;  %v1243_v50 = vpop.f32.mrb[25].mxu0 }
 0x1c4   : > { %v1244_v54 = vpop.f32.mrb[26].mxu0  ;;  %v3850_v50 = vpop.permute.xlu1 %2022 }
 0x1c5   : > { %1543 = vst.msk [vmem:[%s3764_s10 + $0x68] sm:$0xff] %vm1529_vm4, %v1244_v54  ;;  %v1246_v57 = vpop.f32.mrb[27].mxu0 }
 0x1c6   : > { %v1482_v62 = vpop.f32.mrb[40].mxu1 }
 0x1c7   : > { %v1484_v2 = vpop.f32.mrb[41].mxu1  ;;  %1634 = vrot.lane.b32.xlu0 %v1482_v62, %s2930_s7 }
 0x1c8   : > { %v1485_v5 = vpop.f32.mrb[42].mxu1 }
 0x1c9   : > { %1636 = vrot.lane.b32.xlu1 %v1485_v5, %s2930_s7  ;;  %v1487_v6 = vpop.f32.mrb[43].mxu1  ;;  %v3854_v5 = vpop.permute.xlu0 %2024 }
 0x1ca   : > { %v1249_v11 = vpop.f32.mrb[28].mxu0 }
 0x1cb   : > { %1544 = vst.msk [vmem:[%s3764_s10 + $0x70] sm:$0xff] %vm1529_vm4, %v1249_v11  ;;  %v1251_v12 = vpop.f32.mrb[29].mxu0 }
 0x1cc   : > { %v1252_v42 = vpop.f32.mrb[30].mxu0  ;;  %v3858_v12 = vpop.permute.xlu1 %2026 }
 0x1cd   : > { %1545 = vst.msk [vmem:[%s3764_s10 + $0x78] sm:$0xff] %vm1529_vm4, %v1252_v42  ;;  %v1254_v48 = vpop.f32.mrb[31].mxu0 }
 0x1ce   : > { %v1490_v54 = vpop.f32.mrb[44].mxu1 }
 0x1cf   : > { %v1492_v57 = vpop.f32.mrb[45].mxu1  ;;  %1638 = vrot.lane.b32.xlu0 %v1490_v54, %s2930_s7 }
 0x1d0   : > { %v1493_v62 = vpop.f32.mrb[46].mxu1  ;;  %v3866_v58 = vpop.permute.xlu1 %2030 }
 0x1d1   : > { %1640 = vrot.lane.b32.xlu1 %v1493_v62, %s2930_s7  ;;  %v1495_v2 = vpop.f32.mrb[47].mxu1  ;;  %v3863_v62 = vpop.permute.xlu0 %2028 }
 0x1d2   : > { %v1257_v6 = vpop.f32.mrb[32].mxu0 }
 0x1d3   : > { %1546 = vst.msk [vmem:[%s3764_s10 + $0x80] sm:$0xff] %vm1529_vm4, %v1257_v6  ;;  %v1259_v11 = vpop.f32.mrb[33].mxu0 }
 0x1d4   : > { %v1260_v42 = vpop.f32.mrb[34].mxu0 }
 0x1d5   : > { %1547 = vst.msk [vmem:[%s3764_s10 + $0x88] sm:$0xff] %vm1529_vm4, %v1260_v42  ;;  %v1262_v48 = vpop.f32.mrb[35].mxu0 }
 0x1d6   : > { %v1498_v57 = vpop.f32.mrb[48].mxu1  ;;  %v3872_v48 = vpop.permute.xlu0 %2032 }
 0x1d7   : > { %v1500_v54 = vpop.f32.mrb[49].mxu1  ;;  %1642 = vrot.lane.b32.xlu0 %v1498_v57, %s2930_s7 }
 0x1d8   : > { %v1501_v2 = vpop.f32.mrb[50].mxu1 }
 0x1d9   : > { %1644 = vrot.lane.b32.xlu1 %v1501_v2, %s2930_s7  ;;  %v1503_v55 = vpop.f32.mrb[51].mxu1  ;;  %v3875_v2 = vpop.permute.xlu1 %2034 }
 0x1da   : > { %v1265_v6 = vpop.f32.mrb[36].mxu0  ;;  %4319 = vst [vmem:[#allocation8_spill] sm:$0xff] %v3875_v2 }
 0x1db   : > { %1548 = vst.msk [vmem:[%s3764_s10 + $0x90] sm:$0xff] %vm1529_vm4, %v1265_v6  ;;  %v1267_v11 = vpop.f32.mrb[37].mxu0 }
 0x1dc   : > { %v1268_v44 = vpop.f32.mrb[38].mxu0  ;;  %v3880_v11 = vpop.permute.xlu0 %2036 }
 0x1dd   : > { %1549 = vst.msk [vmem:[%s3764_s10 + $0x98] sm:$0xff] %vm1529_vm4, %v1268_v44  ;;  %v1270_v42 = vpop.f32.mrb[39].mxu0 }
 0x1de   : > { %v1506_v57 = vpop.f32.mrb[52].mxu1 }
 0x1df   : > { %v1508_v54 = vpop.f32.mrb[53].mxu1  ;;  %1646 = vrot.lane.b32.xlu0 %v1506_v57, %s2930_s7  ;;  %v3884_v57 = vpop.permute.xlu1 %2038 }
 0x1e0   : > { %v1509_v55 = vpop.f32.mrb[54].mxu1 }
 0x1e1   : > { %1648 = vrot.lane.b32.xlu1 %v1509_v55, %s2930_s7  ;;  %v1511_v51 = vpop.f32.mrb[55].mxu1 }
 0x1e2   : > { %v1273_v41 = vpop.f32.mrb[40].mxu0 }
 0x1e3   : > { %1550 = vst.msk [vmem:[%s3764_s10 + $0xa0] sm:$0xff] %vm1529_vm4, %v1273_v41  ;;  %v1275_v6 = vpop.f32.mrb[41].mxu0 }
 0x1e4   : > { %v1276_v44 = vpop.f32.mrb[42].mxu0 }
 0x1e5   : > { %1551 = vst.msk [vmem:[%s3764_s10 + $0xa8] sm:$0xff] %vm1529_vm4, %v1276_v44  ;;  %v1278_v42 = vpop.f32.mrb[43].mxu0 }
 0x1e6   : > { %v1514_v54 = vpop.f32.mrb[56].mxu1 }
 0x1e7   : > { %v1516_v2 = vpop.f32.mrb[57].mxu1  ;;  %1650 = vrot.lane.b32.xlu0 %v1514_v54, %s2930_s7 }
 0x1e8   : > { %v1517_v41 = vpop.f32.mrb[58].mxu1 }
 0x1e9   : > { %1652 = vrot.lane.b32.xlu1 %v1517_v41, %s2930_s7  ;;  %v1519_v51 = vpop.f32.mrb[59].mxu1  ;;  %v1595_v55 = vpop.permute.xlu0 %1594 }
 0x1ea   : > { %1691 = vst.msk [vmem:[%s3764_s10] sm:$0xff] %vm1690_vm11, %v1595_v55  ;;  %v1281_v6 = vpop.f32.mrb[44].mxu0  ;;  %v1946_v51 = vld [vmem:[%s3381_s6 + $0xf0] sm:$0xff] }
 0x1eb   : > { %1884 = vst.msk [vmem:[%s3764_s10] sm:$0xff] %vm1883_vm12, %v3683_v18  ;;  %v1597_v2 = vpop.permute.xlu1 %1596  ;;  %v1283_v44 = vpop.f32.mrb[45].mxu0 }
 0x1ec   : > { %1552 = vst.msk [vmem:[%s3764_s10 + $0xb0] sm:$0xff] %vm1529_vm4, %v1281_v6  ;;  %v1284_v42 = vpop.f32.mrb[46].mxu0 }
 0x1ed   : > { %2077 = vst.msk [vmem:[%s3764_s10] sm:$0xff] %vm2076_vm13, %v3759_v56  ;;  %v1286_v18 = vpop.f32.mrb[47].mxu0 }
 0x1ee   : > { %1692 = vst.msk [vmem:[%s3764_s10 + $0x8] sm:$0xff] %vm1690_vm11, %v1597_v2  ;;  %v1522_v54 = vpop.f32.mrb[60].mxu1 }
 0x1ef   : > { %1885 = vst.msk [vmem:[%s3764_s10 + $0x8] sm:$0xff] %vm1883_vm12, %v3686_v9  ;;  %v1524_v41 = vpop.f32.mrb[61].mxu1  ;;  %1654 = vrot.lane.b32.xlu0 %v1522_v54, %s2930_s7 }
 0x1f0   : > { %1553 = vst.msk [vmem:[%s3764_s10 + $0xb8] sm:$0xff] %vm1529_vm4, %v1284_v42  ;;  %v1525_v56 = vpop.f32.mrb[62].mxu1 }
 0x1f1   : > { %2078 = vst.msk [vmem:[%s3764_s10 + $0x8] sm:$0xff] %vm2076_vm13, %v3762_v1  ;;  %1656 = vrot.lane.b32.xlu1 %v1525_v56, %s2930_s7  ;;  %v1527_v9 = vpop.f32.mrb[63].mxu1  ;;  %v1599_v55 = vpop.permute.xlu0 %1598  ;;  %v1947_v1 = vld [vmem:[%s3381_s6 + $0xf8] sm:$0xff] }
 0x1f2   : > { %1693 = vst.msk [vmem:[%s3764_s10 + $0x10] sm:$0xff] %vm1690_vm11, %v1599_v55  ;;  %v1289_v6 = vpop.f32.mrb[48].mxu0 }
 0x1f3   : > { %1886 = vst.msk [vmem:[%s3764_s10 + $0x10] sm:$0xff] %vm1883_vm12, %v3690_v34  ;;  %v1601_v2 = vpop.permute.xlu1 %1600  ;;  %v1291_v44 = vpop.f32.mrb[49].mxu0  ;;  %2040 = vrot.lane.b32.xlu0 %v1946_v51, %s2929_s16 }
 0x1f4   : > { %1554 = vst.msk [vmem:[%s3764_s10 + $0xc0] sm:$0xff] %vm1529_vm4, %v1289_v6  ;;  %v1292_v42 = vpop.f32.mrb[50].mxu0 }
 0x1f5   : > { %2079 = vst.msk [vmem:[%s3764_s10 + $0x10] sm:$0xff] %vm2076_vm13, %v3770_v4  ;;  %2042 = vrot.lane.b32.xlu1 %v1947_v1, %s2929_s16  ;;  %v1294_v34 = vpop.f32.mrb[51].mxu0 }
 0x1f6   : > { %1694 = vst.msk [vmem:[%s3764_s10 + $0x18] sm:$0xff] %vm1690_vm11, %v1601_v2 }
 0x1f7   : > { %1887 = vst.msk [vmem:[%s3764_s10 + $0x18] sm:$0xff] %vm1883_vm12, %v3693_v40 }
 0x1f8   : > { %1555 = vst.msk [vmem:[%s3764_s10 + $0xc8] sm:$0xff] %vm1529_vm4, %v1292_v42 }
 0x1f9   : > { %2080 = vst.msk [vmem:[%s3764_s10 + $0x18] sm:$0xff] %vm2076_vm13, %v3773_v7  ;;  %v1603_v4 = vpop.permute.xlu0 %1602 }
 0x1fa   : > { %1695 = vst.msk [vmem:[%s3764_s10 + $0x20] sm:$0xff] %vm1690_vm11, %v1603_v4  ;;  %v1297_v18 = vpop.f32.mrb[52].mxu0 }
 0x1fb   : > { %1888 = vst.msk [vmem:[%s3764_s10 + $0x20] sm:$0xff] %vm1883_vm12, %v3695_v10  ;;  %v1605_v40 = vpop.permute.xlu1 %1604  ;;  %v1299_v54 = vpop.f32.mrb[53].mxu0 }
 0x1fc   : > { %1556 = vst.msk [vmem:[%s3764_s10 + $0xd0] sm:$0xff] %vm1529_vm4, %v1297_v18  ;;  %v1300_v7 = vpop.f32.mrb[54].mxu0 }
 0x1fd   : > { %2081 = vst.msk [vmem:[%s3764_s10 + $0x20] sm:$0xff] %vm2076_vm13, %v3778_v16  ;;  %v1302_v10 = vpop.f32.mrb[55].mxu0 }
 0x1fe   : > { %1696 = vst.msk [vmem:[%s3764_s10 + $0x28] sm:$0xff] %vm1690_vm11, %v1605_v40 }
 0x1ff   : > { %1889 = vst.msk [vmem:[%s3764_s10 + $0x28] sm:$0xff] %vm1883_vm12, %v3697_v19 }
 0x200   : > { %1557 = vst.msk [vmem:[%s3764_s10 + $0xd8] sm:$0xff] %vm1529_vm4, %v1300_v7 }
 0x201   : > { %2082 = vst.msk [vmem:[%s3764_s10 + $0x28] sm:$0xff] %vm2076_vm13, %v3782_v24  ;;  %v1607_v41 = vpop.permute.xlu0 %1606 }
 0x202   : > { %1697 = vst.msk [vmem:[%s3764_s10 + $0x30] sm:$0xff] %vm1690_vm11, %v1607_v41  ;;  %v1305_v16 = vpop.f32.mrb[56].mxu0 }
 0x203   : > { %1890 = vst.msk [vmem:[%s3764_s10 + $0x30] sm:$0xff] %vm1883_vm12, %v3699_v20  ;;  %v1609_v19 = vpop.permute.xlu1 %1608  ;;  %v1307_v56 = vpop.f32.mrb[57].mxu0 }
 0x204   : > { %1558 = vst.msk [vmem:[%s3764_s10 + $0xe0] sm:$0xff] %vm1529_vm4, %v1305_v16  ;;  %v1308_v24 = vpop.f32.mrb[58].mxu0 }
 0x205   : > { %2083 = vst.msk [vmem:[%s3764_s10 + $0x30] sm:$0xff] %vm2076_vm13, %v3786_v49  ;;  %v1310_v20 = vpop.f32.mrb[59].mxu0 }
 0x206   : > { %1698 = vst.msk [vmem:[%s3764_s10 + $0x38] sm:$0xff] %vm1690_vm11, %v1609_v19 }
 0x207   : > { %1891 = vst.msk [vmem:[%s3764_s10 + $0x38] sm:$0xff] %vm1883_vm12, %v3701_v13 }
 0x208   : > { %1559 = vst.msk [vmem:[%s3764_s10 + $0xe8] sm:$0xff] %vm1529_vm4, %v1308_v24 }
 0x209   : > { %2084 = vst.msk [vmem:[%s3764_s10 + $0x38] sm:$0xff] %vm2076_vm13, %v3790_v52  ;;  %v1611_v51 = vpop.permute.xlu0 %1610 }
 0x20a   : > { %1699 = vst.msk [vmem:[%s3764_s10 + $0x40] sm:$0xff] %vm1690_vm11, %v1611_v51  ;;  %v1313_v49 = vpop.f32.mrb[60].mxu0 }
 0x20b   : > { %1892 = vst.msk [vmem:[%s3764_s10 + $0x40] sm:$0xff] %vm1883_vm12, %v3703_v14  ;;  %v1613_v13 = vpop.permute.xlu1 %1612  ;;  %v1315_v9 = vpop.f32.mrb[61].mxu0 }
 0x20c   : > { %1560 = vst.msk [vmem:[%s3764_s10 + $0xf0] sm:$0xff] %vm1529_vm4, %v1313_v49  ;;  %v1316_v52 = vpop.f32.mrb[62].mxu0 }
 0x20d   : > { %2085 = vst.msk [vmem:[%s3764_s10 + $0x40] sm:$0xff] %vm2076_vm13, %v3795_v63  ;;  %v1318_v14 = vpop.f32.mrb[63].mxu0 }
 0x20e   : > { %1700 = vst.msk [vmem:[%s3764_s10 + $0x48] sm:$0xff] %vm1690_vm11, %v1613_v13 }
 0x20f   : > { %1893 = vst.msk [vmem:[%s3764_s10 + $0x48] sm:$0xff] %vm1883_vm12, %v3705_v21 }
 0x210   : > { %1561 = vst.msk [vmem:[%s3764_s10 + $0xf8] sm:$0xff] %vm1529_vm4, %v1316_v52 }
 0x211   : > { %2086 = vst.msk [vmem:[%s3764_s10 + $0x48] sm:$0xff] %vm2076_vm13, %v3798_v59  ;;  %v1615_v55 = vpop.permute.xlu0 %1614 }
 0x212   : > { %1701 = vst.msk [vmem:[%s3764_s10 + $0x50] sm:$0xff] %vm1690_vm11, %v1615_v55 }
 0x213   : > { %1894 = vst.msk [vmem:[%s3764_s10 + $0x50] sm:$0xff] %vm1883_vm12, %v3707_v32  ;;  %v1617_v63 = vpop.permute.xlu1 %1616 }
 0x214   : > { %2087 = vst.msk [vmem:[%s3764_s10 + $0x50] sm:$0xff] %vm2076_vm13, %v3804_v8 }
 0x215   : > { %1702 = vst.msk [vmem:[%s3764_s10 + $0x58] sm:$0xff] %vm1690_vm11, %v1617_v63 }
 0x216   : > { %1895 = vst.msk [vmem:[%s3764_s10 + $0x58] sm:$0xff] %vm1883_vm12, %v3709_v22 }
 0x217   : > { %2088 = vst.msk [vmem:[%s3764_s10 + $0x58] sm:$0xff] %vm2076_vm13, %v3807_v15  ;;  %v4323_v15 = vld [vmem:[#allocation5_spill] sm:$0xff] }
 0x219   : > { %v1619_v21 = vpop.permute.xlu0 %1618 }
 0x21a   : > { %1703 = vst.msk [vmem:[%s3764_s10 + $0x60] sm:$0xff] %vm1690_vm11, %v1619_v21 }
 0x21b   : > { %1896 = vst.msk [vmem:[%s3764_s10 + $0x60] sm:$0xff] %vm1883_vm12, %v3711_v25  ;;  %v1621_v32 = vpop.permute.xlu1 %1620 }
 0x21c   : > { %2089 = vst.msk [vmem:[%s3764_s10 + $0x60] sm:$0xff] %vm2076_vm13, %v3812_v39 }
 0x21d   : > { %1704 = vst.msk [vmem:[%s3764_s10 + $0x68] sm:$0xff] %vm1690_vm11, %v1621_v32 }
 0x21e   : > { %1897 = vst.msk [vmem:[%s3764_s10 + $0x68] sm:$0xff] %vm1883_vm12, %v3713_v53 }
 0x21f   : > { %2090 = vst.msk [vmem:[%s3764_s10 + $0x68] sm:$0xff] %vm2076_vm13, %v3816_v45  ;;  %v4324_v45 = vld [vmem:[#allocation6_spill] sm:$0xff] }
 0x221   : > { %v1623_v22 = vpop.permute.xlu0 %1622 }
 0x222   : > { %1705 = vst.msk [vmem:[%s3764_s10 + $0x70] sm:$0xff] %vm1690_vm11, %v1623_v22 }
 0x223   : > { %1898 = vst.msk [vmem:[%s3764_s10 + $0x70] sm:$0xff] %vm1883_vm12, %v3715_v26  ;;  %v1625_v25 = vpop.permute.xlu1 %1624 }
 0x224   : > { %2091 = vst.msk [vmem:[%s3764_s10 + $0x70] sm:$0xff] %vm2076_vm13, %v3820_v0 }
 0x225   : > { %1706 = vst.msk [vmem:[%s3764_s10 + $0x78] sm:$0xff] %vm1690_vm11, %v1625_v25 }
 0x226   : > { %1899 = vst.msk [vmem:[%s3764_s10 + $0x78] sm:$0xff] %vm1883_vm12, %v3717_v29 }
 0x227   : > { %2092 = vst.msk [vmem:[%s3764_s10 + $0x78] sm:$0xff] %vm2076_vm13, %v3824_v3  ;;  %v4325_v3 = vld [vmem:[#allocation7_spill] sm:$0xff] }
 0x229   : > { %v1627_v53 = vpop.permute.xlu0 %1626 }
 0x22a   : > { %1707 = vst.msk [vmem:[%s3764_s10 + $0x80] sm:$0xff] %vm1690_vm11, %v1627_v53 }
 0x22b   : > { %1900 = vst.msk [vmem:[%s3764_s10 + $0x80] sm:$0xff] %vm1883_vm12, %v3719_v30  ;;  %v1629_v26 = vpop.permute.xlu1 %1628 }
 0x22c   : > { %2093 = vst.msk [vmem:[%s3764_s10 + $0x80] sm:$0xff] %vm2076_vm13, %v3829_v17 }
 0x22d   : > { %1708 = vst.msk [vmem:[%s3764_s10 + $0x88] sm:$0xff] %vm1690_vm11, %v1629_v26 }
 0x22e   : > { %1901 = vst.msk [vmem:[%s3764_s10 + $0x88] sm:$0xff] %vm1883_vm12, %v3721_v31 }
 0x22f   : > { %2094 = vst.msk [vmem:[%s3764_s10 + $0x88] sm:$0xff] %vm2076_vm13, %v3832_v43 }
 0x231   : > { %v1631_v29 = vpop.permute.xlu0 %1630 }
 0x232   : > { %1709 = vst.msk [vmem:[%s3764_s10 + $0x90] sm:$0xff] %vm1690_vm11, %v1631_v29 }
 0x233   : > { %1902 = vst.msk [vmem:[%s3764_s10 + $0x90] sm:$0xff] %vm1883_vm12, %v3723_v33  ;;  %v1633_v30 = vpop.permute.xlu1 %1632 }
 0x234   : > { %2095 = vst.msk [vmem:[%s3764_s10 + $0x90] sm:$0xff] %vm2076_vm13, %v3838_v61 }
 0x235   : > { %1710 = vst.msk [vmem:[%s3764_s10 + $0x98] sm:$0xff] %vm1690_vm11, %v1633_v30 }
 0x236   : > { %1903 = vst.msk [vmem:[%s3764_s10 + $0x98] sm:$0xff] %vm1883_vm12, %v3725_v35 }
 0x237   : > { %2096 = vst.msk [vmem:[%s3764_s10 + $0x98] sm:$0xff] %vm2076_vm13, %v3841_v60 }
 0x239   : > { %v1635_v31 = vpop.permute.xlu0 %1634 }
 0x23a   : > { %1711 = vst.msk [vmem:[%s3764_s10 + $0xa0] sm:$0xff] %vm1690_vm11, %v1635_v31 }
 0x23b   : > { %1904 = vst.msk [vmem:[%s3764_s10 + $0xa0] sm:$0xff] %vm1883_vm12, %v3727_v36  ;;  %v1637_v33 = vpop.permute.xlu1 %1636 }
 0x23c   : > { %2097 = vst.msk [vmem:[%s3764_s10 + $0xa0] sm:$0xff] %vm2076_vm13, %v3846_v23 }
 0x23d   : > { %1712 = vst.msk [vmem:[%s3764_s10 + $0xa8] sm:$0xff] %vm1690_vm11, %v1637_v33 }
 0x23e   : > { %1905 = vst.msk [vmem:[%s3764_s10 + $0xa8] sm:$0xff] %vm1883_vm12, %v3729_v27 }
 0x23f   : > { %2098 = vst.msk [vmem:[%s3764_s10 + $0xa8] sm:$0xff] %vm2076_vm13, %v3850_v50 }
 0x241   : > { %v1639_v35 = vpop.permute.xlu0 %1638 }
 0x242   : > { %1713 = vst.msk [vmem:[%s3764_s10 + $0xb0] sm:$0xff] %vm1690_vm11, %v1639_v35 }
 0x243   : > { %1906 = vst.msk [vmem:[%s3764_s10 + $0xb0] sm:$0xff] %vm1883_vm12, %v3731_v28  ;;  %v1641_v36 = vpop.permute.xlu1 %1640 }
 0x244   : > { %2099 = vst.msk [vmem:[%s3764_s10 + $0xb0] sm:$0xff] %vm2076_vm13, %v3854_v5 }
 0x245   : > { %1714 = vst.msk [vmem:[%s3764_s10 + $0xb8] sm:$0xff] %vm1690_vm11, %v1641_v36 }
 0x246   : > { %1907 = vst.msk [vmem:[%s3764_s10 + $0xb8] sm:$0xff] %vm1883_vm12, %v3733_v37 }
 0x247   : > { %2100 = vst.msk [vmem:[%s3764_s10 + $0xb8] sm:$0xff] %vm2076_vm13, %v3858_v12 }
 0x249   : > { %v1643_v27 = vpop.permute.xlu0 %1642 }
 0x24a   : > { %1715 = vst.msk [vmem:[%s3764_s10 + $0xc0] sm:$0xff] %vm1690_vm11, %v1643_v27 }
 0x24b   : > { %1908 = vst.msk [vmem:[%s3764_s10 + $0xc0] sm:$0xff] %vm1883_vm12, %v3736_v38  ;;  %v1645_v28 = vpop.permute.xlu1 %1644 }
 0x24c   : > { %2101 = vst.msk [vmem:[%s3764_s10 + $0xc0] sm:$0xff] %vm2076_vm13, %v3863_v62 }
 0x24d   : > { %1716 = vst.msk [vmem:[%s3764_s10 + $0xc8] sm:$0xff] %vm1690_vm11, %v1645_v28 }
 0x24e   : > { %1909 = vst.msk [vmem:[%s3764_s10 + $0xc8] sm:$0xff] %vm1883_vm12, %v3739_v46  ;;  %v4320_v46 = vld [vmem:[#allocation3_spill] sm:$0xff] }
 0x24f   : > { %2102 = vst.msk [vmem:[%s3764_s10 + $0xc8] sm:$0xff] %vm2076_vm13, %v3866_v58  ;;  %v4321_v58 = vld [vmem:[#allocation8_spill] sm:$0xff] }
 0x251   : > { %v1647_v37 = vpop.permute.xlu0 %1646 }
 0x252   : > { %1717 = vst.msk [vmem:[%s3764_s10 + $0xd0] sm:$0xff] %vm1690_vm11, %v1647_v37 }
 0x253   : > { %1910 = vst.msk [vmem:[%s3764_s10 + $0xd0] sm:$0xff] %vm1883_vm12, %v3741_v47  ;;  %v1649_v38 = vpop.permute.xlu1 %1648  ;;  %v4322_v47 = vld [vmem:[#allocation4_spill] sm:$0xff] }
 0x254   : > { %2103 = vst.msk [vmem:[%s3764_s10 + $0xd0] sm:$0xff] %vm2076_vm13, %v3872_v48 }
 0x255   : > { %1718 = vst.msk [vmem:[%s3764_s10 + $0xd8] sm:$0xff] %vm1690_vm11, %v1649_v38 }
 0x256   : > { %1911 = vst.msk [vmem:[%s3764_s10 + $0xd8] sm:$0xff] %vm1883_vm12, %v4320_v46 }
 0x257   : > { %2104 = vst.msk [vmem:[%s3764_s10 + $0xd8] sm:$0xff] %vm2076_vm13, %v4321_v58 }
 0x259   : > { %v1651_v59 = vpop.permute.xlu0 %1650 }
 0x25a   : > { %1719 = vst.msk [vmem:[%s3764_s10 + $0xe0] sm:$0xff] %vm1690_vm11, %v1651_v59 }
 0x25b   : > { %1912 = vst.msk [vmem:[%s3764_s10 + $0xe0] sm:$0xff] %vm1883_vm12, %v4322_v47  ;;  %v1653_v8 = vpop.permute.xlu1 %1652 }
 0x25c   : > { %2105 = vst.msk [vmem:[%s3764_s10 + $0xe0] sm:$0xff] %vm2076_vm13, %v3880_v11 }
 0x25d   : > { %1720 = vst.msk [vmem:[%s3764_s10 + $0xe8] sm:$0xff] %vm1690_vm11, %v1653_v8 }
 0x25e   : > { %1913 = vst.msk [vmem:[%s3764_s10 + $0xe8] sm:$0xff] %vm1883_vm12, %v4323_v15 }
 0x25f   : > { %2106 = vst.msk [vmem:[%s3764_s10 + $0xe8] sm:$0xff] %vm2076_vm13, %v3884_v57 }
 0x261   : > { %v1655_v39 = vpop.permute.xlu0 %1654 }
 0x262   : > { %1721 = vst.msk [vmem:[%s3764_s10 + $0xf0] sm:$0xff] %vm1690_vm11, %v1655_v39  ;;  %2115 = sbr.rel (!%p2986_p4) target bundleno = 673 (0x2a1), region = 44 }
 0x263   : > { %1914 = vst.msk [vmem:[%s3764_s10 + $0xf0] sm:$0xff] %vm1883_vm12, %v4324_v45  ;;  %v1657_v0 = vpop.permute.xlu1 %1656 }
 0x264   : > { %1722 = vst.msk [vmem:[%s3764_s10 + $0xf8] sm:$0xff] %vm1690_vm11, %v1657_v0 }
 0x265   : > { %1915 = vst.msk [vmem:[%s3764_s10 + $0xf8] sm:$0xff] %vm1883_vm12, %v4325_v3  ;;  %v2041_v17 = vpop.permute.xlu0 %2040 }
 0x266   : > { %2107 = vst.msk [vmem:[%s3764_s10 + $0xf0] sm:$0xff] %vm2076_vm13, %v2041_v17 }
 0x267   : > { %v2043_v43 = vpop.permute.xlu1 %2042 }
 0x268   : > { %2108 = vst.msk [vmem:[%s3764_s10 + $0xf8] sm:$0xff] %vm2076_vm13, %v2043_v43 }
 0x269   : > { %s4335_s18 = smov (!%p2118_p8, %s2117_s18), 32 }
 0x26a   : > { %s2723_s15 = sshll.u32 %s4335_s18, 7 }
 0x26b   : > { %p2726_p9 = scmp.eq.s32.totalorder %s2723_s15, 0 }
 0x26c   : > { %s4181_s17 = sshrl.u32 (!%p2726_p9), %s4335_s18, 5 }
 0x26d   : > { %2126 = sbr.rel (%p2726_p9) target bundleno = 673 (0x2a1), region = 48  ;;  %p2727_p10 = scmp.le.s32.totalorder (!%p2726_p9), %s4181_s17, 0 }
 0x274   : > { %2422 = sbr.rel (%p2727_p10) target bundleno = 652 (0x28c), region = 133  ;;  %s4326_s21 = smov (!%p2727_p10), %s4175_s14 }
 0x275   : > { %s4327_s26 = smov (!%p2727_p10), %s3764_s10  ;;  %s4190_s27 = smov (!%p2727_p10), 0  }
 0x276   : > { %s4192_s23 = smov (!%p2727_p10), 0  }
 0x27b LB: >> { %v2250_v61 = vld [vmem:[%s2899_s26] sm:$0xff]  ;;  %v2252_v60 = vld [vmem:[%s2899_s26 + $0x8] sm:$0xff]  ;;  %v2254_v23 = vld [vmem:[%s2899_s26 + $0x10] sm:$0xff]  ;;  %s2314_s20 = sadd.s32 1, %s2903_s27  ;;  %s2244_s23 = sadd.s32 1, %s2907_s23   ;;  %s2907_s23 = sphi %s4192_s23, %s2244_s23   ;;  %s2903_s27 = sphi %s4190_s27, %s4330_s27   ;;  %s2899_s26 = sphi %s4327_s26, %s4329_s26   ;;  %s2895_s21 = sphi %s4326_s21, %s4328_s21  }
 0x27c   : >> { %2251 = vst [vmem:[%s2895_s21] sm:$0xff] %v2250_v61  ;;  %2253 = vst [vmem:[%s2895_s21 + $0x8] sm:$0xff] %v2252_v60  ;;  %v2256_v50 = vld [vmem:[%s2899_s26 + $0x18] sm:$0xff]  ;;  %v2258_v5 = vld [vmem:[%s2899_s26 + $0x20] sm:$0xff]  ;;  %p2315_p11 = scmp.ge.s32.totalorder %s2314_s20, %s4181_s17  ;;  %p2243_p12 = scmp.ge.s32.totalorder %s2244_s23, %s4181_s17 }
 0x27d   : >> { %2255 = vst [vmem:[%s2895_s21 + $0x10] sm:$0xff] %v2254_v23  ;;  %v2260_v12 = vld [vmem:[%s2899_s26 + $0x28] sm:$0xff]  ;;  %2257 = vst [vmem:[%s2895_s21 + $0x18] sm:$0xff] %v2256_v50  ;;  %v2262_v62 = vld [vmem:[%s2899_s26 + $0x30] sm:$0xff] }
 0x27e   : >> { %2259 = vst [vmem:[%s2895_s21 + $0x20] sm:$0xff] %v2258_v5  ;;  %2261 = vst [vmem:[%s2895_s21 + $0x28] sm:$0xff] %v2260_v12  ;;  %v2264_v48 = vld [vmem:[%s2899_s26 + $0x38] sm:$0xff]  ;;  %v2266_v11 = vld [vmem:[%s2899_s26 + $0x40] sm:$0xff]  ;;  %s4337_s20 = smov (%p2315_p11, %s2314_s20), 0 }
 0x27f   : >> { %2263 = vst [vmem:[%s2895_s21 + $0x30] sm:$0xff] %v2262_v62  ;;  %2265 = vst [vmem:[%s2895_s21 + $0x38] sm:$0xff] %v2264_v48  ;;  %v2268_v57 = vld [vmem:[%s2899_s26 + $0x48] sm:$0xff]  ;;  %v2270_v6 = vld [vmem:[%s2899_s26 + $0x50] sm:$0xff]  ;;  %s2728_s24 = sshll.u32 %s4337_s20, 8  ;;  %s4330_s27 = smov %s4337_s20 }
 0x280   : >> { %2267 = vst [vmem:[%s2895_s21 + $0x40] sm:$0xff] %v2266_v11  ;;  %v2272_v1 = vld [vmem:[%s2899_s26 + $0x58] sm:$0xff]  ;;  %2269 = vst [vmem:[%s2895_s21 + $0x48] sm:$0xff] %v2268_v57  ;;  %v2274_v2 = vld [vmem:[%s2899_s26 + $0x60] sm:$0xff]  ;;  %s4248_s28 = scalar_lea.vmem %s3764_s10, %s2728_s24 [#allocation2]   ;;  %s2320_s29 = scalar_lea.vmem %s4175_s14, %s2728_s24  }
 0x281   : >> { %2271 = vst [vmem:[%s2895_s21 + $0x50] sm:$0xff] %v2270_v6  ;;  %2273 = vst [vmem:[%s2895_s21 + $0x58] sm:$0xff] %v2272_v1  ;;  %v2276_v44 = vld [vmem:[%s2899_s26 + $0x68] sm:$0xff]  ;;  %v2278_v42 = vld [vmem:[%s2899_s26 + $0x70] sm:$0xff] }
 0x282   : >> { %2275 = vst [vmem:[%s2895_s21 + $0x60] sm:$0xff] %v2274_v2  ;;  %2277 = vst [vmem:[%s2895_s21 + $0x68] sm:$0xff] %v2276_v44  ;;  %v2280_v34 = vld [vmem:[%s2899_s26 + $0x78] sm:$0xff]  ;;  %v2282_v4 = vld [vmem:[%s2899_s26 + $0x80] sm:$0xff] }
 0x283   : >> { %2279 = vst [vmem:[%s2895_s21 + $0x70] sm:$0xff] %v2278_v42  ;;  %v2284_v18 = vld [vmem:[%s2899_s26 + $0x88] sm:$0xff]  ;;  %2281 = vst [vmem:[%s2895_s21 + $0x78] sm:$0xff] %v2280_v34  ;;  %v2286_v40 = vld [vmem:[%s2899_s26 + $0x90] sm:$0xff] }
 0x284   : >> { %2283 = vst [vmem:[%s2895_s21 + $0x80] sm:$0xff] %v2282_v4  ;;  %2285 = vst [vmem:[%s2895_s21 + $0x88] sm:$0xff] %v2284_v18  ;;  %v2288_v54 = vld [vmem:[%s2899_s26 + $0x98] sm:$0xff]  ;;  %v2290_v7 = vld [vmem:[%s2899_s26 + $0xa0] sm:$0xff] }
 0x285   : >> { %2287 = vst [vmem:[%s2895_s21 + $0x90] sm:$0xff] %v2286_v40  ;;  %2289 = vst [vmem:[%s2895_s21 + $0x98] sm:$0xff] %v2288_v54  ;;  %v2292_v10 = vld [vmem:[%s2899_s26 + $0xa8] sm:$0xff]  ;;  %v2294_v41 = vld [vmem:[%s2899_s26 + $0xb0] sm:$0xff]  ;;  %2246 = sbr.rel (!%p2243_p12) target bundleno = 635 (0x27b), region = 139 }
 0x286   : >> { %2291 = vst [vmem:[%s2895_s21 + $0xa0] sm:$0xff] %v2290_v7  ;;  %v2296_v16 = vld [vmem:[%s2899_s26 + $0xb8] sm:$0xff]  ;;  %2293 = vst [vmem:[%s2895_s21 + $0xa8] sm:$0xff] %v2292_v10  ;;  %v2298_v19 = vld [vmem:[%s2899_s26 + $0xc0] sm:$0xff] }
 0x287   : >> { %2295 = vst [vmem:[%s2895_s21 + $0xb0] sm:$0xff] %v2294_v41  ;;  %2297 = vst [vmem:[%s2895_s21 + $0xb8] sm:$0xff] %v2296_v16  ;;  %v2300_v56 = vld [vmem:[%s2899_s26 + $0xc8] sm:$0xff]  ;;  %v2302_v24 = vld [vmem:[%s2899_s26 + $0xd0] sm:$0xff] }
 0x288   : >> { %2299 = vst [vmem:[%s2895_s21 + $0xc0] sm:$0xff] %v2298_v19  ;;  %2301 = vst [vmem:[%s2895_s21 + $0xc8] sm:$0xff] %v2300_v56  ;;  %v2304_v20 = vld [vmem:[%s2899_s26 + $0xd8] sm:$0xff]  ;;  %v2306_v51 = vld [vmem:[%s2899_s26 + $0xe0] sm:$0xff] }
 0x289   : >> { %2303 = vst [vmem:[%s2895_s21 + $0xd0] sm:$0xff] %v2302_v24  ;;  %v2308_v49 = vld [vmem:[%s2899_s26 + $0xe8] sm:$0xff]  ;;  %2305 = vst [vmem:[%s2895_s21 + $0xd8] sm:$0xff] %v2304_v20  ;;  %v2310_v13 = vld [vmem:[%s2899_s26 + $0xf0] sm:$0xff] }
 0x28a   : >> { %2307 = vst [vmem:[%s2895_s21 + $0xe0] sm:$0xff] %v2306_v51  ;;  %2309 = vst [vmem:[%s2895_s21 + $0xe8] sm:$0xff] %v2308_v49  ;;  %v2312_v9 = vld [vmem:[%s2899_s26 + $0xf8] sm:$0xff]  ;;  %s4329_s26 = smov %s4248_s28 }
 0x28b   : >> { %2311 = vst [vmem:[%s2895_s21 + $0xf0] sm:$0xff] %v2310_v13  ;;  %2313 = vst [vmem:[%s2895_s21 + $0xf8] sm:$0xff] %v2312_v9  ;;  %s4328_s21 = smov %s2320_s29 }
 0x28c PF: > { %s4289_s30 = sand.u32 31, %s4335_s18   ;;  %s2739_s6 = sshll.u32 %s4181_s17, 8 }
 0x28d   : > { %s2325_s16 = scalar_lea.vmem %s3764_s10, %s2739_s6 [#allocation2]   ;;  %s2327_s7 = scalar_lea.vmem %s4175_s14, %s2739_s6  }
 0x28e   : > { %p2733_p13 = scmp.le.s32.totalorder %s4289_s30, 0 }
 0x28f   : > { %s2909_s8 = smov (!%p2733_p13), %s2327_s7   ;;  %s2913_s9 = smov (!%p2733_p13), %s2325_s16  }
 0x290   : > { %2436 = sbr.rel (%p2733_p13) target bundleno = 673 (0x2a1), region = 144  ;;  %s2917_s11 = smov (!%p2733_p13), 0  }
 0x291   : > { %s2921_s12 = smov (!%p2733_p13), 0  }
 0x297 LB: >> { %v2337_v52 = vld [vmem:[%s2915_s9] sm:$0xff]  ;;  %s2339_s18 = sadd.s32 1, %s2919_s11  ;;  %s2331_s12 = sadd.s32 1, %s2923_s12   ;;  %s2923_s12 = sphi %s2921_s12, %s2331_s12   ;;  %s2919_s11 = sphi %s2917_s11, %s2918_s11   ;;  %s2915_s9 = sphi %s2913_s9, %s2344_s9   ;;  %s2911_s8 = sphi %s2909_s8, %s2345_s8  }
 0x298   : >> { %2338 = vst [vmem:[%s2911_s8] sm:$0xff] %v2337_v52  ;;  %p2340_p0 = scmp.ge.s32.totalorder %s2339_s18, %s4289_s30  ;;  %p2330_p1 = scmp.ge.s32.totalorder %s2331_s12, %s4289_s30 }
 0x29a   : >> { %s4339_s18 = smov (%p2340_p0, %s2339_s18), 0  ;;  %2333 = sbr.rel (!%p2330_p1) target bundleno = 663 (0x297), region = 150 }
 0x29b   : >> { %s2734_s10 = sshll.u32 %s4339_s18, 3  ;;  %s2918_s11 = smov %s4339_s18  }
 0x29c   : >> { %s2344_s9 = scalar_lea.vmem %s2325_s16, %s2734_s10 [#allocation2]   ;;  %s2345_s8 = scalar_lea.vmem %s2327_s7, %s2734_s10  }
 0x2a1 PF: > { %p12_p2 = scmp.ge.s32.totalorder %s2976_s22, 4   ;;  %s4331_s18 = smov %s2887_s19 }
 0x2a2   : > { %s4332_s19 = smov %s2984_s25  ;;  %s4333_s20 = smov %s2976_s22 }
 0x2a3   :  { %14 = sbr.rel (!%p12_p2) target bundleno = 2 (0x2), region = 161 }

</bundles_post_ra>
